<compile_context>
chip_gen: v5e
topology: v5e:2x2
jax: 0.10.0
libtpu: 0.0.40
codegen_flags: <defaults>
</compile_context>

<pallas_src>
import functools

import jax
import jax.numpy as jnp
from jax.experimental import pallas as pl
from jax.experimental.pallas import tpu as pltpu

IN_FEATURES = 1024     # fc1 in_features (fixed by the module)
HIDDEN = 512           # fc1 out_features (fixed by the module)
C_LANES = 128          # pad class dim to a multiple of the 128-lane width
MAX_CLASS_TILE = 2048  # class-lane tile (bounds w_att / out VMEM blocks)


def _round_up(x, m):
    return ((x + m - 1) // m) * m


def cls_unseen_kernel(feats_ref, w1t_ref, b1_ref, watt_ref, out_ref, f_ref):
    """One (batch-tile, class-tile) grid step.

    feats_ref : (TB, 1024)    f32   activation tile
    w1t_ref   : (1024, 512)   bf16  fc1 weight, (in, out) layout (resident)
    b1_ref    : (1, 512)      f32   fc1 bias (resident)
    watt_ref  : (512, TC)     bf16  attribute matrix tile, (hidden, class)
    out_ref   : (TB, TC)      f32
    f_ref     : (TB, 512)     bf16  VMEM cache of the fc1 output
    """
    # fc1 is invariant across class tiles: compute it once per batch tile
    # (the class axis is the inner, sequential grid dimension).
    @pl.when(pl.program_id(1) == 0)
    def _():
        f = jnp.dot(feats_ref[...].astype(jnp.bfloat16), w1t_ref[...],
                    preferred_element_type=jnp.float32)
        f_ref[...] = (f + b1_ref[...]).astype(jnp.bfloat16)

    # Second matmul: (TB, 512) @ (512, TC) on the MXU, bf16 in / f32 out.
    out_ref[...] = jnp.dot(f_ref[...], watt_ref[...],
                           preferred_element_type=jnp.float32)


def prepare_params(w1, b1, w_att):
    """One-time parameter repack (do at init, NOT per forward call).

    w1    : (512, 1024) f32  (PyTorch fc1.weight layout)
    b1    : (512,)      f32
    w_att : (C, 512)    f32  (self.W)
    """
    c = int(w_att.shape[0])
    c_pad = _round_up(c, C_LANES)
    w1_t = jnp.transpose(jnp.asarray(w1, jnp.float32)).astype(jnp.bfloat16)
    b1_2d = jnp.asarray(b1, jnp.float32).reshape(1, HIDDEN)
    w_att_t = jnp.transpose(jnp.asarray(w_att, jnp.float32))        # (512, C)
    w_att_t = jnp.pad(w_att_t, ((0, 0), (0, c_pad - c))).astype(jnp.bfloat16)
    return {"w1_t": w1_t, "b1": b1_2d, "w_att_t": w_att_t, "num_classes": c}


@functools.partial(jax.jit, static_argnames=("num_classes",))
def _forward(feats, w1_t, b1_2d, w_att_t, *, num_classes):
    # Note: if the upstream producer can emit bf16 feats directly, passing
    # bf16 here halves activation HBM traffic at large B (do NOT add a
    # standalone astype in the wrapper -- it is a separate mem-bound pass).
    B = feats.shape[0]
    c_pad = w_att_t.shape[1]

    # Class tiling keeps the w_att / out VMEM blocks bounded for huge C.
    tc = min(c_pad, MAX_CLASS_TILE)
    nc = pl.cdiv(c_pad, tc)

    # Batch tiling: large tiles amortize the ~0.35us/step grid overhead and
    # reach the HBM roofline; the ragged last tile is masked by Pallas.
    cap = 1024 if c_pad <= 1024 else 512
    tb = min(cap, _round_up(B, 16))
    rows = B
    if B < tb:                      # tiny batch: pad a few rows once (cheap)
        feats = jnp.pad(feats, ((0, tb - B), (0, 0)))
        rows = tb
    nb = pl.cdiv(rows, tb)

    const = dict(pipeline_mode=pl.Buffered(1))   # resident, single-buffered
    watt_kwargs = const if nc == 1 else {}       # double-buffer only if tiled

    out = pl.pallas_call(
        cls_unseen_kernel,
        out_shape=jax.ShapeDtypeStruct((rows, c_pad), jnp.float32),
        grid_spec=pltpu.PrefetchScalarGridSpec(
            num_scalar_prefetch=0,
            grid=(nb, nc),
            in_specs=[
                pl.BlockSpec((tb, IN_FEATURES), lambda b, c: (b, 0)),
                pl.BlockSpec((IN_FEATURES, HIDDEN), lambda b, c: (0, 0),
                             **const),
                pl.BlockSpec((1, HIDDEN), lambda b, c: (0, 0), **const),
                pl.BlockSpec((HIDDEN, tc), lambda b, c: (0, c),
                             **watt_kwargs),
            ],
            out_specs=pl.BlockSpec((tb, tc), lambda b, c: (b, c)),
            scratch_shapes=[pltpu.VMEM((tb, HIDDEN), jnp.bfloat16)],
        ),
        compiler_params=pltpu.CompilerParams(
            dimension_semantics=("parallel", "arbitrary"),
            vmem_limit_bytes=48 * 1024 * 1024),
    )(feats, w1_t, b1_2d, w_att_t)

    return out[:B, :num_classes]


def cls_unseen_train_forward(feats, params):
    """feats: (B, 1024) f32; params from prepare_params()."""
    return _forward(feats, params["w1_t"], params["b1"], params["w_att_t"],
                    num_classes=params["num_classes"])


if __name__ == "__main__":
    key = jax.random.PRNGKey(0)
    k_feats, k_w1, k_b1, k_att = jax.random.split(key, 4)

    B = 8                 # small batch
    NUM_CLASSES = 16      # unseen classes (att rows)

    feats = jax.random.normal(k_feats, (B, IN_FEATURES), dtype=jnp.float32)

    # Deterministic synthetic params (mimics nn.Linear uniform init).
    bound = 1.0 / (IN_FEATURES ** 0.5)
    w1 = jax.random.uniform(k_w1, (HIDDEN, IN_FEATURES),
                            minval=-bound, maxval=bound, dtype=jnp.float32)
    b1 = jax.random.uniform(k_b1, (HIDDEN,),
                            minval=-bound, maxval=bound, dtype=jnp.float32)
    w_att = jax.random.normal(k_att, (NUM_CLASSES, HIDDEN), dtype=jnp.float32)

    params = prepare_params(w1, b1, w_att)     # init-time repack (once)
    out = cls_unseen_train_forward(feats, params)
    out = jax.block_until_ready(out)

    # Pure-JAX f32 reference (module semantics).  Kernel uses bf16 weights /
    # activations (f32 accumulation) for both matmuls -> bf16-level tolerance.
    ref = (feats @ w1.T + b1) @ w_att.T
    assert out.shape == (B, NUM_CLASSES)
    max_err = float(jnp.max(jnp.abs(out - ref)))
    assert jnp.allclose(out, ref, rtol=3e-2, atol=3e-1), max_err

    print("KERNEL_OK")
</pallas_src>

<mosaic_0001>
module attributes {stable_mosaic.version = 11 : i64} {
  func.func @cls_unseen_kernel(%arg0: i32, %arg1: i32, %arg2: memref<16x1024xf32, #tpu.memory_space<vmem>>, %arg3: memref<1024x512xbf16, #tpu.memory_space<vmem>>, %arg4: memref<1x512xf32, #tpu.memory_space<vmem>>, %arg5: memref<512x128xbf16, #tpu.memory_space<vmem>>, %arg6: memref<16x128xf32, #tpu.memory_space<vmem>>, %arg7: memref<16x512xbf16, #tpu.memory_space<vmem>>) attributes {dimension_semantics = [#tpu.dimension_semantics<parallel>, #tpu.dimension_semantics<arbitrary>], iteration_bounds = array<i64: 1, 1>, scalar_prefetch = 0 : i64, scratch_operands = 1 : i64, tpu.core_type = #tpu.core_type<tc>, window_params = [{transform_indices = @transform_0, window_bounds = array<i64: 16, 1024>}, {pipeline_mode = #tpu.pipeline_mode<synchronous>, transform_indices = @transform_1, window_bounds = array<i64: 1024, 512>}, {pipeline_mode = #tpu.pipeline_mode<synchronous>, transform_indices = @transform_2, window_bounds = array<i64: 1, 512>}, {pipeline_mode = #tpu.pipeline_mode<synchronous>, transform_indices = @transform_3, window_bounds = array<i64: 512, 128>}, {transform_indices = @transform_4, window_bounds = array<i64: 16, 128>}]} {
    %c0_i32 = arith.constant 0 : i32
    %0 = arith.cmpi eq, %arg1, %c0_i32 : i32
    %1 = arith.extui %0 : i1 to i32
    %c0_i32_0 = arith.constant 0 : i32
    %2 = arith.cmpi ne, %1, %c0_i32_0 : i32
    scf.if %2 {
      %c0_6 = arith.constant 0 : index
      %c0_7 = arith.constant 0 : index
      %7 = vector.load %arg2[%c0_6, %c0_7] : memref<16x1024xf32, #tpu.memory_space<vmem>>, vector<16x1024xf32>
      %8 = arith.truncf %7 : vector<16x1024xf32> to vector<16x1024xbf16>
      %c0_8 = arith.constant 0 : index
      %c0_9 = arith.constant 0 : index
      %9 = vector.load %arg3[%c0_8, %c0_9] : memref<1024x512xbf16, #tpu.memory_space<vmem>>, vector<1024x512xbf16>
      %cst_10 = arith.constant dense<0.000000e+00> : vector<16x512xf32>
      %10 = tpu.matmul %8, %9, %cst_10 {dimension_numbers = #tpu.dot_dimension_numbers<[1], [0], [0], [1], [0, 0, 1, 1], [], []>} : vector<16x1024xbf16>, vector<1024x512xbf16>, vector<16x512xf32> -> vector<16x512xf32>
      %c0_11 = arith.constant 0 : index
      %c0_12 = arith.constant 0 : index
      %11 = vector.load %arg4[%c0_11, %c0_12] : memref<1x512xf32, #tpu.memory_space<vmem>>, vector<1x512xf32>
      %12 = vector.broadcast %11 : vector<1x512xf32> to vector<16x512xf32>
      %13 = arith.addf %10, %12 : vector<16x512xf32>
      %14 = arith.truncf %13 : vector<16x512xf32> to vector<16x512xbf16>
      %c0_13 = arith.constant 0 : index
      %c0_14 = arith.constant 0 : index
      %15 = vector.load %arg7[%c0_13, %c0_14] : memref<16x512xbf16, #tpu.memory_space<vmem>>, vector<16x512xbf16>
      tpu.vector_store %arg7[%c0_13, %c0_14], %14 {strides = array<i32>} : memref<16x512xbf16, #tpu.memory_space<vmem>>, vector<16x512xbf16>,
    } else {
    }
    %c0 = arith.constant 0 : index
    %c0_1 = arith.constant 0 : index
    %3 = vector.load %arg7[%c0, %c0_1] : memref<16x512xbf16, #tpu.memory_space<vmem>>, vector<16x512xbf16>
    %c0_2 = arith.constant 0 : index
    %c0_3 = arith.constant 0 : index
    %4 = vector.load %arg5[%c0_2, %c0_3] : memref<512x128xbf16, #tpu.memory_space<vmem>>, vector<512x128xbf16>
    %cst = arith.constant dense<0.000000e+00> : vector<16x128xf32>
    %5 = tpu.matmul %3, %4, %cst {dimension_numbers = #tpu.dot_dimension_numbers<[1], [0], [0], [1], [0, 0, 1, 1], [], []>} : vector<16x512xbf16>, vector<512x128xbf16>, vector<16x128xf32> -> vector<16x128xf32>
    %c0_4 = arith.constant 0 : index
    %c0_5 = arith.constant 0 : index
    %6 = vector.load %arg6[%c0_4, %c0_5] : memref<16x128xf32, #tpu.memory_space<vmem>>, vector<16x128xf32>
    tpu.vector_store %arg6[%c0_4, %c0_5], %5 {strides = array<i32>} : memref<16x128xf32, #tpu.memory_space<vmem>>, vector<16x128xf32>,
    return
  }
  func.func @transform_0(%arg0: i32, %arg1: i32) -> (i32, i32) {
    %c0_i32 = arith.constant 0 : i32
    %c0_i32_0 = arith.constant 0 : i32
    return %arg0, %c0_i32 : i32, i32
  }
  func.func @transform_1(%arg0: i32, %arg1: i32) -> (i32, i32) {
    %c0_i32 = arith.constant 0 : i32
    %c0_i32_0 = arith.constant 0 : i32
    %c0_i32_1 = arith.constant 0 : i32
    return %c0_i32, %c0_i32_0 : i32, i32
  }
  func.func @transform_2(%arg0: i32, %arg1: i32) -> (i32, i32) {
    %c0_i32 = arith.constant 0 : i32
    %c0_i32_0 = arith.constant 0 : i32
    %c0_i32_1 = arith.constant 0 : i32
    return %c0_i32, %c0_i32_0 : i32, i32
  }
  func.func @transform_3(%arg0: i32, %arg1: i32) -> (i32, i32) {
    %c0_i32 = arith.constant 0 : i32
    %c0_i32_0 = arith.constant 0 : i32
    return %c0_i32, %arg1 : i32, i32
  }
  func.func @transform_4(%arg0: i32, %arg1: i32) -> (i32, i32) {
    %c0_i32 = arith.constant 0 : i32
    return %arg0, %arg1 : i32, i32
  }
}

</mosaic_0001>

<bundles_post_ra>
// kernel: _forward.1
= control target key start
LH: loop header
LB: loop body
LE: loop exit
PB: predicated region body
PF: predicated region fallthrough
CT: control target
= control target key end

     0   :  { %9 = vsyncpa [#allocation4], 0  ;;  %s4165_s0 = inlined_call_operand.vmem [shape: f32[16,1024], index: 0, kind: input, shape index: {}]   ;;  %s4166_s1 = inlined_call_operand.hbm [shape: bf16[1024,512], index: 1, kind: input, shape index: {}]   ;;  %s4167_s2 = inlined_call_operand.vmem [shape: f32[1,512], index: 2, kind: input, shape index: {}]   ;;  %s4168_s3 = inlined_call_operand.hbm [shape: bf16[512,128], index: 3, kind: input, shape index: {}]   ;;  %s4169_s4 = inlined_call_operand.vmem [shape: f32[16,128], index: 4, kind: output, shape index: {}]  }
   0x1   :  { %s17_s17 = sshll.u32 %s4166_s1, 4  ;;  %s18_s17 = int_to_ptr.hbm [resolvable:$true] %s17_s17 }
   0x2   :  { %10 = vsyncpa [#allocation6], 0  ;;  %s3941_s18 = smov [#allocation3]   ;;  %s32_s22 = sshll.u32 %s4168_s3, 4  ;;  %s33_s22 = int_to_ptr.hbm [resolvable:$true] %s32_s22 }
   0x3   :  { %s19_s19 = sshll.u32 %s3941_s18, 4  ;;  %s3942_s23 = smov 256   ;;  %s20_s19 = int_to_ptr.vmem [resolvable:$true] %s19_s19 }
   0x4   :  { %s3943_s24 = smov 16   ;;  %s3944_s25 = smov [#allocation5]  }
   0x5   :  { %25 = dma.hbm_to_vmem [thread:$0]  %s18_s17, 32768, %s20_s19, [#allocation4], %s3942_s23, %s3942_s23, %s3943_s24  }
   0x6   :  { %s34_s26 = sshll.u32 %s3944_s25, 4  ;;  %s3945_s27 = smov 64   ;;  %s35_s26 = int_to_ptr.vmem [resolvable:$true] %s34_s26 }
   0x7   :  { %s3946_s28 = smov 4  }
   0x8   :  { %40 = dma.hbm_to_vmem [thread:$0]  %s33_s22, 4096, %s35_s26, [#allocation6], %s3945_s27, %s3945_s27, %s3946_s28  }
   0x9   :  { %3937 = dma.done.wait [#allocation4], 32768  }
   0xa   :  { %3938 = vsyncadd [#allocation4], 4294934528 }
   0xb   :  { %3939 = dma.done.wait [#allocation6], 4096  }
   0xc   :  { %3940 = vsyncadd [#allocation6], 4294963200  ;;  %v2537_v0 = vld [vmem:[#allocation3 + $0xe0] sm:$0xf]  ;;  %v3621_v1 = vld [vmem:[#allocation3 + $0xec] sm:$0xf0] }
   0xd   :  { %v2665_v2 = vld [vmem:[#allocation3 + $0x1e0] sm:$0xf]  ;;  %v2538_v3 = vor.u32 %v3621_v1, %v2537_v0  ;;  %v3653_v4 = vld [vmem:[#allocation3 + $0x1ec] sm:$0xf0] }
   0xe   :  { %v2793_v5 = vld [vmem:[#allocation3 + $0x2e0] sm:$0xf]  ;;  %v3685_v6 = vld [vmem:[#allocation3 + $0x2ec] sm:$0xf0]  ;;  %v2666_v7 = vor.u32 %v3653_v4, %v2665_v2 }
   0xf   :  { %v2794_v8 = vor.u32 %v3685_v6, %v2793_v5  ;;  %v2921_v9 = vld [vmem:[#allocation3 + $0x3e0] sm:$0xf]  ;;  %v3717_v10 = vld [vmem:[#allocation3 + $0x3ec] sm:$0xf0]  ;;  %1623 = vmatpush.bf16.msra.mxu0 %v2538_v3 }
  0x10   :  { %v2521_v11 = vld [vmem:[#allocation3 + $0xc0] sm:$0xf]  ;;  %v2922_v12 = vor.u32 %v3717_v10, %v2921_v9  ;;  %v3617_v13 = vld [vmem:[#allocation3 + $0xcc] sm:$0xf0]  ;;  %1637 = vmatpush.bf16.msra.mxu1 %v2666_v7 }
  0x11   :  { %v2649_v14 = vld [vmem:[#allocation3 + $0x1c0] sm:$0xf]  ;;  %v3649_v15 = vld [vmem:[#allocation3 + $0x1cc] sm:$0xf0]  ;;  %1651 = vmatpush.bf16.msra.mxu2 %v2794_v8  ;;  %v2522_v16 = vor.u32 %v3617_v13, %v2521_v11 }
  0x12   :  { %v2650_v17 = vor.u32 %v3649_v15, %v2649_v14  ;;  %v2777_v18 = vld [vmem:[#allocation3 + $0x2c0] sm:$0xf]  ;;  %v3681_v19 = vld [vmem:[#allocation3 + $0x2cc] sm:$0xf0]  ;;  %1665 = vmatpush.bf16.msra.mxu3 %v2922_v12 }
  0x13   :  { %v2905_v20 = vld [vmem:[#allocation3 + $0x3c0] sm:$0xf]  ;;  %v2778_v21 = vor.u32 %v3681_v19, %v2777_v18  ;;  %v3713_v22 = vld [vmem:[#allocation3 + $0x3cc] sm:$0xf0]  ;;  %1624 = vmatpush.bf16.msra.mxu0 %v2522_v16 }
  0x14   :  { %v2505_v23 = vld [vmem:[#allocation3 + $0xa0] sm:$0xf]  ;;  %v3613_v24 = vld [vmem:[#allocation3 + $0xac] sm:$0xf0]  ;;  %v2906_v25 = vor.u32 %v3713_v22, %v2905_v20  ;;  %1638 = vmatpush.bf16.msra.mxu1 %v2650_v17 }
  0x15   :  { %v2633_v26 = vld [vmem:[#allocation3 + $0x1a0] sm:$0xf]  ;;  %v3645_v27 = vld [vmem:[#allocation3 + $0x1ac] sm:$0xf0]  ;;  %v2506_v29 = vor.u32 %v3613_v24, %v2505_v23  ;;  %1652 = vmatpush.bf16.msra.mxu2 %v2778_v21 }
  0x16   :  { %v2761_v28 = vld [vmem:[#allocation3 + $0x2a0] sm:$0xf]  ;;  %v3677_v30 = vld [vmem:[#allocation3 + $0x2ac] sm:$0xf0]  ;;  %v2634_v33 = vor.u32 %v3645_v27, %v2633_v26  ;;  %1666 = vmatpush.bf16.msra.mxu3 %v2906_v25 }
  0x17   :  { %v2889_v31 = vld [vmem:[#allocation3 + $0x3a0] sm:$0xf]  ;;  %v3709_v32 = vld [vmem:[#allocation3 + $0x3ac] sm:$0xf0]  ;;  %v2762_v34 = vor.u32 %v3677_v30, %v2761_v28  ;;  %1625 = vmatpush.bf16.msra.mxu0 %v2506_v29 }
  0x18   :  { %v2489_v35 = vld [vmem:[#allocation3 + $0x80] sm:$0xf]  ;;  %v3609_v36 = vld [vmem:[#allocation3 + $0x8c] sm:$0xf0]  ;;  %v2890_v38 = vor.u32 %v3709_v32, %v2889_v31  ;;  %1639 = vmatpush.bf16.msra.mxu1 %v2634_v33 }
  0x19   :  { %v2617_v37 = vld [vmem:[#allocation3 + $0x180] sm:$0xf]  ;;  %v3641_v39 = vld [vmem:[#allocation3 + $0x18c] sm:$0xf0]  ;;  %v2490_v44 = vor.u32 %v3609_v36, %v2489_v35  ;;  %1653 = vmatpush.bf16.msra.mxu2 %v2762_v34 }
  0x1a   :  { %v2745_v40 = vld [vmem:[#allocation3 + $0x280] sm:$0xf]  ;;  %v3673_v41 = vld [vmem:[#allocation3 + $0x28c] sm:$0xf0]  ;;  %v2618_v45 = vor.u32 %v3641_v39, %v2617_v37  ;;  %1667 = vmatpush.bf16.msra.mxu3 %v2890_v38 }
  0x1b   :  { %v2873_v42 = vld [vmem:[#allocation3 + $0x380] sm:$0xf]  ;;  %v3705_v43 = vld [vmem:[#allocation3 + $0x38c] sm:$0xf0]  ;;  %v2746_v46 = vor.u32 %v3673_v41, %v2745_v40  ;;  %1626 = vmatpush.bf16.msra.mxu0 %v2490_v44 }
  0x1c   :  { %v2473_v47 = vld [vmem:[#allocation3 + $0x60] sm:$0xf]  ;;  %v3605_v48 = vld [vmem:[#allocation3 + $0x6c] sm:$0xf0]  ;;  %v2874_v50 = vor.u32 %v3705_v43, %v2873_v42  ;;  %1640 = vmatpush.bf16.msra.mxu1 %v2618_v45 }
  0x1d   :  { %v2601_v49 = vld [vmem:[#allocation3 + $0x160] sm:$0xf]  ;;  %v3637_v51 = vld [vmem:[#allocation3 + $0x16c] sm:$0xf0]  ;;  %v2474_v56 = vor.u32 %v3605_v48, %v2473_v47  ;;  %1654 = vmatpush.bf16.msra.mxu2 %v2746_v46 }
  0x1e   :  { %v2729_v52 = vld [vmem:[#allocation3 + $0x260] sm:$0xf]  ;;  %v3669_v53 = vld [vmem:[#allocation3 + $0x26c] sm:$0xf0]  ;;  %v2602_v57 = vor.u32 %v3637_v51, %v2601_v49  ;;  %1668 = vmatpush.bf16.msra.mxu3 %v2874_v50 }
  0x1f   :  { %v2857_v54 = vld [vmem:[#allocation3 + $0x360] sm:$0xf]  ;;  %v3701_v55 = vld [vmem:[#allocation3 + $0x36c] sm:$0xf0]  ;;  %v2730_v58 = vor.u32 %v3669_v53, %v2729_v52  ;;  %1627 = vmatpush.bf16.msra.mxu0 %v2474_v56 }
  0x20   :  { %v2457_v59 = vld [vmem:[#allocation3 + $0x40] sm:$0xf]  ;;  %v3601_v60 = vld [vmem:[#allocation3 + $0x4c] sm:$0xf0]  ;;  %v2858_v62 = vor.u32 %v3701_v55, %v2857_v54  ;;  %1641 = vmatpush.bf16.msra.mxu1 %v2602_v57 }
  0x21   :  { %v2585_v61 = vld [vmem:[#allocation3 + $0x140] sm:$0xf]  ;;  %v3633_v63 = vld [vmem:[#allocation3 + $0x14c] sm:$0xf0]  ;;  %v2458_v4 = vor.u32 %v3601_v60, %v2457_v59  ;;  %1655 = vmatpush.bf16.msra.mxu2 %v2730_v58 }
  0x22   :  { %v2713_v0 = vld [vmem:[#allocation3 + $0x240] sm:$0xf]  ;;  %v3665_v1 = vld [vmem:[#allocation3 + $0x24c] sm:$0xf0]  ;;  %v2586_v5 = vor.u32 %v3633_v63, %v2585_v61  ;;  %1669 = vmatpush.bf16.msra.mxu3 %v2858_v62 }
  0x23   :  { %v2841_v2 = vld [vmem:[#allocation3 + $0x340] sm:$0xf]  ;;  %v3697_v3 = vld [vmem:[#allocation3 + $0x34c] sm:$0xf0]  ;;  %v2714_v6 = vor.u32 %v3665_v1, %v2713_v0  ;;  %1628 = vmatpush.bf16.msra.mxu0 %v2458_v4 }
  0x24   :  { %v2441_v7 = vld [vmem:[#allocation3 + $0x20] sm:$0xf]  ;;  %v3597_v8 = vld [vmem:[#allocation3 + $0x2c] sm:$0xf0]  ;;  %v2842_v10 = vor.u32 %v3697_v3, %v2841_v2  ;;  %1642 = vmatpush.bf16.msra.mxu1 %v2586_v5 }
  0x25   :  { %v2569_v9 = vld [vmem:[#allocation3 + $0x120] sm:$0xf]  ;;  %v3629_v11 = vld [vmem:[#allocation3 + $0x12c] sm:$0xf0]  ;;  %v2442_v16 = vor.u32 %v3597_v8, %v2441_v7  ;;  %1656 = vmatpush.bf16.msra.mxu2 %v2714_v6  ;;  %v54_v6 = vld [vmem:[%s4165_s0 + $0x8] sm:$0xff] }
  0x26   :  { %v2697_v12 = vld [vmem:[#allocation3 + $0x220] sm:$0xf]  ;;  %v3661_v13 = vld [vmem:[#allocation3 + $0x22c] sm:$0xf0]  ;;  %v2570_v19 = vor.u32 %v3629_v11, %v2569_v9  ;;  %1670 = vmatpush.bf16.msra.mxu3 %v2842_v10  ;;  %v62_v7 = vld [vmem:[%s4165_s0 + $0x48] sm:$0xff] }
  0x27   :  { %v2825_v14 = vld [vmem:[#allocation3 + $0x320] sm:$0xf]  ;;  %v3693_v15 = vld [vmem:[#allocation3 + $0x32c] sm:$0xf0]  ;;  %v2698_v20 = vor.u32 %v3661_v13, %v2697_v12  ;;  %1629 = vmatpush.bf16.msra.mxu0 %v2442_v16  ;;  %v56_v8 = vld [vmem:[%s4165_s0 + $0x18] sm:$0xff]  ;;  %v4005_v10 = vpack.c.bf16 %v62_v7, %v54_v6 }
  0x28   :  { %v2425_v17 = vld [vmem:[#allocation3] sm:$0xf]  ;;  %v3593_v18 = vld [vmem:[#allocation3 + $0xc] sm:$0xf0]  ;;  %v2826_v24 = vor.u32 %v3693_v15, %v2825_v14  ;;  %1643 = vmatpush.bf16.msra.mxu1 %v2570_v19  ;;  %v64_v11 = vld [vmem:[%s4165_s0 + $0x58] sm:$0xff] }
  0x29   :  { %v2553_v21 = vld [vmem:[#allocation3 + $0x100] sm:$0xf]  ;;  %v3625_v22 = vld [vmem:[#allocation3 + $0x10c] sm:$0xf0]  ;;  %v2426_v31 = vor.u32 %v3593_v18, %v2425_v17  ;;  %1657 = vmatpush.bf16.msra.mxu2 %v2698_v20  ;;  %v4010_v17 = vpack.c.bf16 %v64_v11, %v56_v8 }
  0x2a   :  { %v2681_v23 = vld [vmem:[#allocation3 + $0x200] sm:$0xf]  ;;  %v3657_v25 = vld [vmem:[#allocation3 + $0x20c] sm:$0xf0]  ;;  %v2554_v35 = vor.u32 %v3625_v22, %v2553_v21  ;;  %1671 = vmatpush.bf16.msra.mxu3 %v2826_v24 }
  0x2b   :  { %v2809_v26 = vld [vmem:[#allocation3 + $0x300] sm:$0xf]  ;;  %v3689_v27 = vld [vmem:[#allocation3 + $0x30c] sm:$0xf0]  ;;  %v2682_v36 = vor.u32 %v3657_v25, %v2681_v23  ;;  %1630 = vmatpush.bf16.msra.mxu0 %v2426_v31 }
  0x2c   :  { %v3049_v28 = vld [vmem:[#allocation3 + $0x4e0] sm:$0xf]  ;;  %v3749_v29 = vld [vmem:[#allocation3 + $0x4ec] sm:$0xf0]  ;;  %v2810_v39 = vor.u32 %v3689_v27, %v2809_v26  ;;  %1644 = vmatpush.bf16.msra.mxu1 %v2554_v35 }
  0x2d   :  { %v3177_v30 = vld [vmem:[#allocation3 + $0x5e0] sm:$0xf]  ;;  %v3781_v32 = vld [vmem:[#allocation3 + $0x5ec] sm:$0xf0]  ;;  %v3050_v40 = vor.u32 %v3749_v29, %v3049_v28  ;;  %1658 = vmatpush.bf16.msra.mxu2 %v2682_v36 }
  0x2e   :  { %v3305_v33 = vld [vmem:[#allocation3 + $0x6e0] sm:$0xf]  ;;  %v3813_v34 = vld [vmem:[#allocation3 + $0x6ec] sm:$0xf0]  ;;  %v3178_v43 = vor.u32 %v3781_v32, %v3177_v30  ;;  %1672 = vmatpush.bf16.msra.mxu3 %v2810_v39 }
  0x2f   :  { %v3433_v37 = vld [vmem:[#allocation3 + $0x7e0] sm:$0xf]  ;;  %v3845_v38 = vld [vmem:[#allocation3 + $0x7ec] sm:$0xf0]  ;;  %v3306_v44 = vor.u32 %v3813_v34, %v3305_v33  ;;  %1679 = vmatpush.bf16.msrb.mxu0 %v3050_v40  ;;  %1645 = vmatmul.bf16.vlgmr.msra.gmra.mxu1 %v4005_v10 }
  0x30   :  { %v3033_v41 = vld [vmem:[#allocation3 + $0x4c0] sm:$0xf]  ;;  %v3745_v42 = vld [vmem:[#allocation3 + $0x4cc] sm:$0xf0]  ;;  %v3434_v48 = vor.u32 %v3845_v38, %v3433_v37  ;;  %1693 = vmatpush.bf16.msrb.mxu1 %v3178_v43 }
  0x31   :  { %v3161_v45 = vld [vmem:[#allocation3 + $0x5c0] sm:$0xf]  ;;  %v3777_v46 = vld [vmem:[#allocation3 + $0x5cc] sm:$0xf0]  ;;  %v3034_v55 = vor.u32 %v3745_v42, %v3033_v41  ;;  %1707 = vmatpush.bf16.msrb.mxu2 %v3306_v44  ;;  %1673 = vmatmul.bf16.vlgmr.msra.gmra.mxu3 %v4010_v17 }
  0x32   :  { %v3289_v47 = vld [vmem:[#allocation3 + $0x6c0] sm:$0xf]  ;;  %v3809_v49 = vld [vmem:[#allocation3 + $0x6cc] sm:$0xf0]  ;;  %v3162_v60 = vor.u32 %v3777_v46, %v3161_v45  ;;  %1721 = vmatpush.bf16.msrb.mxu3 %v3434_v48 }
  0x33   :  { %v3417_v50 = vld [vmem:[#allocation3 + $0x7c0] sm:$0xf]  ;;  %v3841_v51 = vld [vmem:[#allocation3 + $0x7cc] sm:$0xf0]  ;;  %v3290_v61 = vor.u32 %v3809_v49, %v3289_v47  ;;  %1680 = vmatpush.bf16.msrb.mxu0 %v3034_v55 }
  0x34   :  { %v53_v52 = vld [vmem:[%s4165_s0] sm:$0xff]  ;;  %v55_v54 = vld [vmem:[%s4165_s0 + $0x10] sm:$0xff]  ;;  %v3418_v2 = vor.u32 %v3841_v51, %v3417_v50  ;;  %1694 = vmatpush.bf16.msrb.mxu1 %v3162_v60 }
  0x35   :  { %v61_v53 = vld [vmem:[%s4165_s0 + $0x40] sm:$0xff]  ;;  %v3741_v57 = vld [vmem:[#allocation3 + $0x4ac] sm:$0xf0]  ;;  %1708 = vmatpush.bf16.msrb.mxu2 %v3290_v61 }
  0x36   :  { %v3017_v56 = vld [vmem:[#allocation3 + $0x4a0] sm:$0xf]  ;;  %v3987_v58 = vpack.c.bf16 %v61_v53, %v53_v52  ;;  %v63_v59 = vld [vmem:[%s4165_s0 + $0x50] sm:$0xff]  ;;  %1722 = vmatpush.bf16.msrb.mxu3 %v3418_v2 }
  0x37   :  { %v3145_v62 = vld [vmem:[#allocation3 + $0x5a0] sm:$0xf]  ;;  %v3773_v63 = vld [vmem:[#allocation3 + $0x5ac] sm:$0xf0]  ;;  %v3992_v1 = vpack.c.bf16 %v63_v59, %v55_v54  ;;  %v3018_v9 = vor.u32 %v3741_v57, %v3017_v56 }
  0x38   :  { %v3273_v0 = vld [vmem:[#allocation3 + $0x6a0] sm:$0xf]  ;;  %v3805_v3 = vld [vmem:[#allocation3 + $0x6ac] sm:$0xf0]  ;;  %1631 = vmatmul.bf16.vlgmr.msra.gmra.mxu0 %v3987_v58  ;;  %v3146_v12 = vor.u32 %v3773_v63, %v3145_v62 }
  0x39   :  { %v3401_v4 = vld [vmem:[#allocation3 + $0x7a0] sm:$0xf]  ;;  %v3837_v5 = vld [vmem:[#allocation3 + $0x7ac] sm:$0xf0]  ;;  %1659 = vmatmul.bf16.vlgmr.msra.gmra.mxu2 %v3992_v1  ;;  %v3274_v13 = vor.u32 %v3805_v3, %v3273_v0  ;;  %1681 = vmatpush.bf16.msrb.mxu0 %v3018_v9  ;;  %v3619_v9 = vld [vmem:[#allocation3 + $0xe4] sm:$0xf] }
  0x3a   :  { %v3001_v14 = vld [vmem:[#allocation3 + $0x480] sm:$0xf]  ;;  %v3737_v15 = vld [vmem:[#allocation3 + $0x48c] sm:$0xf0]  ;;  %v3402_v18 = vor.u32 %v3837_v5, %v3401_v4  ;;  %1695 = vmatpush.bf16.msrb.mxu1 %v3146_v12  ;;  %v2539_v12 = vld [vmem:[#allocation3 + $0xf0] sm:$0xf0] }
  0x3b   :  { %v3129_v16 = vld [vmem:[#allocation3 + $0x580] sm:$0xf]  ;;  %v3769_v19 = vld [vmem:[#allocation3 + $0x58c] sm:$0xf0]  ;;  %v3002_v24 = vor.u32 %v3737_v15, %v3001_v14  ;;  %1709 = vmatpush.bf16.msrb.mxu2 %v3274_v13  ;;  %v3651_v13 = vld [vmem:[#allocation3 + $0x1e4] sm:$0xf] }
  0x3c   :  { %v3257_v20 = vld [vmem:[#allocation3 + $0x680] sm:$0xf]  ;;  %v3801_v21 = vld [vmem:[#allocation3 + $0x68c] sm:$0xf0]  ;;  %v3130_v25 = vor.u32 %v3769_v19, %v3129_v16  ;;  %1723 = vmatpush.bf16.msrb.mxu3 %v3402_v18  ;;  %v2667_v14 = vld [vmem:[#allocation3 + $0x1f0] sm:$0xf0] }
  0x3d   :  { %v3385_v22 = vld [vmem:[#allocation3 + $0x780] sm:$0xf]  ;;  %v3833_v23 = vld [vmem:[#allocation3 + $0x78c] sm:$0xf0]  ;;  %v3258_v26 = vor.u32 %v3801_v21, %v3257_v20  ;;  %1682 = vmatpush.bf16.msrb.mxu0 %v3002_v24  ;;  %v3683_v15 = vld [vmem:[#allocation3 + $0x2e4] sm:$0xf] }
  0x3e   :  { %v2985_v27 = vld [vmem:[#allocation3 + $0x460] sm:$0xf]  ;;  %v3733_v28 = vld [vmem:[#allocation3 + $0x46c] sm:$0xf0]  ;;  %v3386_v30 = vor.u32 %v3833_v23, %v3385_v22  ;;  %1696 = vmatpush.bf16.msrb.mxu1 %v3130_v25  ;;  %v2795_v16 = vld [vmem:[#allocation3 + $0x2f0] sm:$0xf0] }
  0x3f   :  { %v3113_v29 = vld [vmem:[#allocation3 + $0x560] sm:$0xf]  ;;  %v3765_v31 = vld [vmem:[#allocation3 + $0x56c] sm:$0xf0]  ;;  %v2986_v36 = vor.u32 %v3733_v28, %v2985_v27  ;;  %1710 = vmatpush.bf16.msrb.mxu2 %v3258_v26  ;;  %v3715_v18 = vld [vmem:[#allocation3 + $0x3e4] sm:$0xf] }
  0x40   :  { %v3241_v32 = vld [vmem:[#allocation3 + $0x660] sm:$0xf]  ;;  %v3797_v33 = vld [vmem:[#allocation3 + $0x66c] sm:$0xf0]  ;;  %v3114_v37 = vor.u32 %v3765_v31, %v3113_v29  ;;  %1724 = vmatpush.bf16.msrb.mxu3 %v3386_v30  ;;  %v2923_v20 = vld [vmem:[#allocation3 + $0x3f0] sm:$0xf0]  ;;  %v2542_v29 = vor.u32 %v3619_v9, %v2539_v12 }
  0x41   :  { %v3369_v34 = vld [vmem:[#allocation3 + $0x760] sm:$0xf]  ;;  %v3829_v35 = vld [vmem:[#allocation3 + $0x76c] sm:$0xf0]  ;;  %v3242_v38 = vor.u32 %v3797_v33, %v3241_v32  ;;  %1683 = vmatpush.bf16.msrb.mxu0 %v2986_v36  ;;  %v58_v27 = vld [vmem:[%s4165_s0 + $0x28] sm:$0xff]  ;;  %v2670_v33 = vor.u32 %v3651_v13, %v2667_v14 }
  0x42   :  { %v2969_v39 = vld [vmem:[#allocation3 + $0x440] sm:$0xf]  ;;  %v3729_v40 = vld [vmem:[#allocation3 + $0x44c] sm:$0xf0]  ;;  %v3370_v42 = vor.u32 %v3829_v35, %v3369_v34  ;;  %1697 = vmatpush.bf16.msrb.mxu1 %v3114_v37  ;;  %v66_v30 = vld [vmem:[%s4165_s0 + $0x68] sm:$0xff]  ;;  %v2798_v34 = vor.u32 %v3683_v15, %v2795_v16 }
  0x43   :  { %v3097_v41 = vld [vmem:[#allocation3 + $0x540] sm:$0xf]  ;;  %v3761_v43 = vld [vmem:[#allocation3 + $0x54c] sm:$0xf0]  ;;  %v2970_v48 = vor.u32 %v3729_v40, %v2969_v39  ;;  %1711 = vmatpush.bf16.msrb.mxu2 %v3242_v38  ;;  %v60_v31 = vld [vmem:[%s4165_s0 + $0x38] sm:$0xff]  ;;  %v2926_v38 = vor.u32 %v3715_v18, %v2923_v20 }
  0x44   :  { %v3225_v44 = vld [vmem:[#allocation3 + $0x640] sm:$0xf]  ;;  %v3793_v45 = vld [vmem:[#allocation3 + $0x64c] sm:$0xf0]  ;;  %v3098_v50 = vor.u32 %v3761_v43, %v3097_v41  ;;  %1725 = vmatpush.bf16.msrb.mxu3 %v3370_v42  ;;  %v68_v32 = vld [vmem:[%s4165_s0 + $0x78] sm:$0xff] }
  0x45   :  { %v3353_v46 = vld [vmem:[#allocation3 + $0x740] sm:$0xf]  ;;  %v3825_v47 = vld [vmem:[#allocation3 + $0x74c] sm:$0xf0]  ;;  %v3226_v51 = vor.u32 %v3793_v45, %v3225_v44  ;;  %1684 = vmatpush.bf16.msrb.mxu0 %v2970_v48  ;;  %v3615_v35 = vld [vmem:[#allocation3 + $0xc4] sm:$0xf]  ;;  %v4042_v44 = vpack.c.bf16 %v66_v30, %v58_v27 }
  0x46   :  { %v2953_v49 = vld [vmem:[#allocation3 + $0x420] sm:$0xf]  ;;  %v3725_v52 = vld [vmem:[#allocation3 + $0x42c] sm:$0xf0]  ;;  %v3354_v55 = vor.u32 %v3825_v47, %v3353_v46  ;;  %1698 = vmatpush.bf16.msrb.mxu1 %v3098_v50  ;;  %v2523_v36 = vld [vmem:[#allocation3 + $0xd0] sm:$0xf0]  ;;  %v4044_v47 = vpack.c.bf16 %v68_v32, %v60_v31 }
  0x47   :  { %v3081_v53 = vld [vmem:[#allocation3 + $0x520] sm:$0xf]  ;;  %v3757_v54 = vld [vmem:[#allocation3 + $0x52c] sm:$0xf0]  ;;  %v2954_v63 = vor.u32 %v3725_v52, %v2953_v49  ;;  %1712 = vmatpush.bf16.msrb.mxu2 %v3226_v51  ;;  %v3647_v37 = vld [vmem:[#allocation3 + $0x1c4] sm:$0xf]  ;;  %v2526_v48 = vor.u32 %v3615_v35, %v2523_v36 }
  0x48   :  { %v3209_v56 = vld [vmem:[#allocation3 + $0x620] sm:$0xf]  ;;  %v3789_v57 = vld [vmem:[#allocation3 + $0x62c] sm:$0xf0]  ;;  %v3082_v5 = vor.u32 %v3757_v54, %v3081_v53  ;;  %1726 = vmatpush.bf16.msrb.mxu3 %v3354_v55  ;;  %v2651_v40 = vld [vmem:[#allocation3 + $0x1d0] sm:$0xf0] }
  0x49   :  { %v3337_v59 = vld [vmem:[#allocation3 + $0x720] sm:$0xf]  ;;  %v3821_v60 = vld [vmem:[#allocation3 + $0x72c] sm:$0xf0]  ;;  %v3210_v6 = vor.u32 %v3789_v57, %v3209_v56  ;;  %1685 = vmatpush.bf16.msrb.mxu0 %v2954_v63  ;;  %v3679_v41 = vld [vmem:[#allocation3 + $0x2c4] sm:$0xf]  ;;  %v2654_v49 = vor.u32 %v3647_v37, %v2651_v40 }
  0x4a   :  { %v2937_v61 = vld [vmem:[#allocation3 + $0x400] sm:$0xf]  ;;  %v3721_v62 = vld [vmem:[#allocation3 + $0x40c] sm:$0xf0]  ;;  %v3338_v11 = vor.u32 %v3821_v60, %v3337_v59  ;;  %1699 = vmatpush.bf16.msrb.mxu1 %v3082_v5  ;;  %v2779_v42 = vld [vmem:[#allocation3 + $0x2d0] sm:$0xf0] }
  0x4b   :  { %v3065_v0 = vld [vmem:[#allocation3 + $0x500] sm:$0xf]  ;;  %v3753_v2 = vld [vmem:[#allocation3 + $0x50c] sm:$0xf0]  ;;  %v2938_v19 = vor.u32 %v3721_v62, %v2937_v61  ;;  %1713 = vmatpush.bf16.msrb.mxu2 %v3210_v6  ;;  %v3711_v45 = vld [vmem:[#allocation3 + $0x3c4] sm:$0xf]  ;;  %v2782_v50 = vor.u32 %v3679_v41, %v2779_v42 }
  0x4c   :  { %v3193_v3 = vld [vmem:[#allocation3 + $0x600] sm:$0xf]  ;;  %v3785_v4 = vld [vmem:[#allocation3 + $0x60c] sm:$0xf0]  ;;  %v3066_v23 = vor.u32 %v3753_v2, %v3065_v0  ;;  %1727 = vmatpush.bf16.msrb.mxu3 %v3338_v11  ;;  %v2907_v46 = vld [vmem:[#allocation3 + $0x3d0] sm:$0xf0] }
  0x4d   :  { %v3321_v7 = vld [vmem:[#allocation3 + $0x700] sm:$0xf]  ;;  %v3817_v8 = vld [vmem:[#allocation3 + $0x70c] sm:$0xf0]  ;;  %v3194_v24 = vor.u32 %v3785_v4, %v3193_v3  ;;  %1686 = vmatpush.bf16.msrb.mxu0 %v2938_v19  ;;  %v3611_v51 = vld [vmem:[#allocation3 + $0xa4] sm:$0xf]  ;;  %v2910_v54 = vor.u32 %v3711_v45, %v2907_v46 }
  0x4e   :  { %v57_v21 = vld [vmem:[%s4165_s0 + $0x20] sm:$0xff]  ;;  %v59_v25 = vld [vmem:[%s4165_s0 + $0x30] sm:$0xff]  ;;  %v3322_v28 = vor.u32 %v3817_v8, %v3321_v7  ;;  %1700 = vmatpush.bf16.msrb.mxu1 %v3066_v23 }
  0x4f   :  { %v65_v22 = vld [vmem:[%s4165_s0 + $0x60] sm:$0xff]  ;;  %v67_v26 = vld [vmem:[%s4165_s0 + $0x70] sm:$0xff]  ;;  %1714 = vmatpush.bf16.msrb.mxu2 %v3194_v24 }
  0x50   :  { %v4038_v39 = vpack.c.bf16 %v65_v22, %v57_v21  ;;  %v4040_v43 = vpack.c.bf16 %v67_v26, %v59_v25  ;;  %1728 = vmatpush.bf16.msrb.mxu3 %v3322_v28  ;;  %v2507_v52 = vld [vmem:[#allocation3 + $0xb0] sm:$0xf0]  ;;  %v3643_v53 = vld [vmem:[#allocation3 + $0x1a4] sm:$0xf] }
  0x51   :  { %1735 = vmatpush.bf16.msra.mxu0 %v2542_v29  ;;  %v2635_v55 = vld [vmem:[#allocation3 + $0x1b0] sm:$0xf0]  ;;  %v3675_v56 = vld [vmem:[#allocation3 + $0x2a4] sm:$0xf]  ;;  %1701 = vmatmul.bf16.vlgmr.msrb.gmra.mxu1 %v4042_v44  ;;  %v2510_v61 = vor.u32 %v3611_v51, %v2507_v52 }
  0x52   :  { %1749 = vmatpush.bf16.msra.mxu1 %v2670_v33  ;;  %1687 = vmatmul.bf16.vlgmr.msrb.gmra.mxu0 %v4038_v39  ;;  %v2763_v57 = vld [vmem:[#allocation3 + $0x2b0] sm:$0xf0]  ;;  %v3707_v59 = vld [vmem:[#allocation3 + $0x3a4] sm:$0xf]  ;;  %v2638_v62 = vor.u32 %v3643_v53, %v2635_v55 }
  0x53   :  { %1763 = vmatpush.bf16.msra.mxu2 %v2798_v34  ;;  %v2891_v60 = vld [vmem:[#allocation3 + $0x3b0] sm:$0xf0]  ;;  %1729 = vmatmul.bf16.vlgmr.msrb.gmra.mxu3 %v4044_v47  ;;  %v2766_v63 = vor.u32 %v3675_v56, %v2763_v57  ;;  %v3607_v0 = vld [vmem:[#allocation3 + $0x84] sm:$0xf] }
  0x54   :  { %1777 = vmatpush.bf16.msra.mxu3 %v2926_v38  ;;  %1715 = vmatmul.bf16.vlgmr.msrb.gmra.mxu2 %v4040_v43  ;;  %v2491_v2 = vld [vmem:[#allocation3 + $0x90] sm:$0xf0]  ;;  %v3639_v3 = vld [vmem:[#allocation3 + $0x184] sm:$0xf]  ;;  %v2894_v4 = vor.u32 %v3707_v59, %v2891_v60 }
  0x55   :  { %1736 = vmatpush.bf16.msra.mxu0 %v2526_v48  ;;  %v2619_v5 = vld [vmem:[#allocation3 + $0x190] sm:$0xf0]  ;;  %v3671_v6 = vld [vmem:[#allocation3 + $0x284] sm:$0xf]  ;;  %v2494_v11 = vor.u32 %v3607_v0, %v2491_v2 }
  0x56   :  { %1750 = vmatpush.bf16.msra.mxu1 %v2654_v49  ;;  %v2747_v7 = vld [vmem:[#allocation3 + $0x290] sm:$0xf0]  ;;  %v3703_v8 = vld [vmem:[#allocation3 + $0x384] sm:$0xf]  ;;  %v2622_v12 = vor.u32 %v3639_v3, %v2619_v5 }
  0x57   :  { %1764 = vmatpush.bf16.msra.mxu2 %v2782_v50  ;;  %v2875_v9 = vld [vmem:[#allocation3 + $0x390] sm:$0xf0]  ;;  %v2750_v13 = vor.u32 %v3671_v6, %v2747_v7  ;;  %v3603_v14 = vld [vmem:[#allocation3 + $0x64] sm:$0xf] }
  0x58   :  { %1778 = vmatpush.bf16.msra.mxu3 %v2910_v54  ;;  %v2475_v15 = vld [vmem:[#allocation3 + $0x70] sm:$0xf0]  ;;  %v3635_v16 = vld [vmem:[#allocation3 + $0x164] sm:$0xf]  ;;  %v2878_v18 = vor.u32 %v3703_v8, %v2875_v9 }
  0x59   :  { %1737 = vmatpush.bf16.msra.mxu0 %v2510_v61  ;;  %v2603_v19 = vld [vmem:[#allocation3 + $0x170] sm:$0xf0]  ;;  %v3667_v20 = vld [vmem:[#allocation3 + $0x264] sm:$0xf]  ;;  %v2478_v24 = vor.u32 %v3603_v14, %v2475_v15 }
  0x5a   :  { %1751 = vmatpush.bf16.msra.mxu1 %v2638_v62  ;;  %v2731_v21 = vld [vmem:[#allocation3 + $0x270] sm:$0xf0]  ;;  %v3699_v22 = vld [vmem:[#allocation3 + $0x364] sm:$0xf]  ;;  %v2606_v25 = vor.u32 %v3635_v16, %v2603_v19 }
  0x5b   :  { %1765 = vmatpush.bf16.msra.mxu2 %v2766_v63  ;;  %v2859_v23 = vld [vmem:[#allocation3 + $0x370] sm:$0xf0]  ;;  %v2734_v26 = vor.u32 %v3667_v20, %v2731_v21  ;;  %v3599_v27 = vld [vmem:[#allocation3 + $0x44] sm:$0xf] }
  0x5c   :  { %1779 = vmatpush.bf16.msra.mxu3 %v2894_v4  ;;  %v2459_v28 = vld [vmem:[#allocation3 + $0x50] sm:$0xf0]  ;;  %v3631_v29 = vld [vmem:[#allocation3 + $0x144] sm:$0xf]  ;;  %v2862_v30 = vor.u32 %v3699_v22, %v2859_v23 }
  0x5d   :  { %1738 = vmatpush.bf16.msra.mxu0 %v2494_v11  ;;  %v2587_v31 = vld [vmem:[#allocation3 + $0x150] sm:$0xf0]  ;;  %v3663_v32 = vld [vmem:[#allocation3 + $0x244] sm:$0xf]  ;;  %v2462_v36 = vor.u32 %v3599_v27, %v2459_v28 }
  0x5e   :  { %1752 = vmatpush.bf16.msra.mxu1 %v2622_v12  ;;  %v2715_v33 = vld [vmem:[#allocation3 + $0x250] sm:$0xf0]  ;;  %v3695_v34 = vld [vmem:[#allocation3 + $0x344] sm:$0xf]  ;;  %v2590_v37 = vor.u32 %v3631_v29, %v2587_v31 }
  0x5f   :  { %1766 = vmatpush.bf16.msra.mxu2 %v2750_v13  ;;  %v2843_v35 = vld [vmem:[#allocation3 + $0x350] sm:$0xf0]  ;;  %v2718_v38 = vor.u32 %v3663_v32, %v2715_v33  ;;  %v3595_v40 = vld [vmem:[#allocation3 + $0x24] sm:$0xf] }
  0x60   :  { %1780 = vmatpush.bf16.msra.mxu3 %v2878_v18  ;;  %v2443_v41 = vld [vmem:[#allocation3 + $0x30] sm:$0xf0]  ;;  %v3627_v42 = vld [vmem:[#allocation3 + $0x124] sm:$0xf]  ;;  %v2846_v45 = vor.u32 %v3695_v34, %v2843_v35 }
  0x61   :  { %1739 = vmatpush.bf16.msra.mxu0 %v2478_v24  ;;  %v2571_v46 = vld [vmem:[#allocation3 + $0x130] sm:$0xf0]  ;;  %v3659_v48 = vld [vmem:[#allocation3 + $0x224] sm:$0xf]  ;;  %v2446_v52 = vor.u32 %v3595_v40, %v2443_v41 }
  0x62   :  { %1753 = vmatpush.bf16.msra.mxu1 %v2606_v25  ;;  %v2699_v49 = vld [vmem:[#allocation3 + $0x230] sm:$0xf0]  ;;  %v3691_v50 = vld [vmem:[#allocation3 + $0x324] sm:$0xf]  ;;  %v2574_v55 = vor.u32 %v3627_v42, %v2571_v46 }
  0x63   :  { %1767 = vmatpush.bf16.msra.mxu2 %v2734_v26  ;;  %v2827_v51 = vld [vmem:[#allocation3 + $0x330] sm:$0xf0]  ;;  %v3591_v53 = vld [vmem:[#allocation3 + $0x4] sm:$0xf]  ;;  %v2702_v56 = vor.u32 %v3659_v48, %v2699_v49 }
  0x64   :  { %1781 = vmatpush.bf16.msra.mxu3 %v2862_v30  ;;  %v2427_v54 = vld [vmem:[#allocation3 + $0x10] sm:$0xf0]  ;;  %v3623_v57 = vld [vmem:[#allocation3 + $0x104] sm:$0xf]  ;;  %v2830_v61 = vor.u32 %v3691_v50, %v2827_v51 }
  0x65   :  { %1740 = vmatpush.bf16.msra.mxu0 %v2462_v36  ;;  %v2555_v59 = vld [vmem:[#allocation3 + $0x110] sm:$0xf0]  ;;  %v3655_v60 = vld [vmem:[#allocation3 + $0x204] sm:$0xf]  ;;  %v2430_v5 = vor.u32 %v3591_v53, %v2427_v54 }
  0x66   :  { %1754 = vmatpush.bf16.msra.mxu1 %v2590_v37  ;;  %v2683_v62 = vld [vmem:[#allocation3 + $0x210] sm:$0xf0]  ;;  %v3687_v63 = vld [vmem:[#allocation3 + $0x304] sm:$0xf]  ;;  %v2558_v9 = vor.u32 %v3623_v57, %v2555_v59 }
  0x67   :  { %1768 = vmatpush.bf16.msra.mxu2 %v2718_v38  ;;  %v2811_v0 = vld [vmem:[#allocation3 + $0x310] sm:$0xf0]  ;;  %v3747_v2 = vld [vmem:[#allocation3 + $0x4e4] sm:$0xf]  ;;  %v2686_v11 = vor.u32 %v3655_v60, %v2683_v62 }
  0x68   :  { %1782 = vmatpush.bf16.msra.mxu3 %v2846_v45  ;;  %v3051_v3 = vld [vmem:[#allocation3 + $0x4f0] sm:$0xf0]  ;;  %v3779_v4 = vld [vmem:[#allocation3 + $0x5e4] sm:$0xf]  ;;  %v2814_v14 = vor.u32 %v3687_v63, %v2811_v0 }
  0x69   :  { %1741 = vmatpush.bf16.msra.mxu0 %v2446_v52  ;;  %v3179_v6 = vld [vmem:[#allocation3 + $0x5f0] sm:$0xf0]  ;;  %v3811_v7 = vld [vmem:[#allocation3 + $0x6e4] sm:$0xf]  ;;  %v3054_v15 = vor.u32 %v3747_v2, %v3051_v3 }
  0x6a   :  { %v3307_v8 = vld [vmem:[#allocation3 + $0x6f0] sm:$0xf0]  ;;  %1755 = vmatpush.bf16.msra.mxu1 %v2574_v55  ;;  %v3843_v12 = vld [vmem:[#allocation3 + $0x7e4] sm:$0xf]  ;;  %v3182_v16 = vor.u32 %v3779_v4, %v3179_v6 }
  0x6b   :  { %1769 = vmatpush.bf16.msra.mxu2 %v2702_v56  ;;  %v3435_v13 = vld [vmem:[#allocation3 + $0x7f0] sm:$0xf0]  ;;  %v3310_v18 = vor.u32 %v3811_v7, %v3307_v8  ;;  %v3743_v19 = vld [vmem:[#allocation3 + $0x4c4] sm:$0xf] }
  0x6c   :  { %1783 = vmatpush.bf16.msra.mxu3 %v2830_v61  ;;  %v3035_v20 = vld [vmem:[#allocation3 + $0x4d0] sm:$0xf0]  ;;  %v3775_v21 = vld [vmem:[#allocation3 + $0x5c4] sm:$0xf]  ;;  %v3438_v22 = vor.u32 %v3843_v12, %v3435_v13 }
  0x6d   :  { %1742 = vmatpush.bf16.msra.mxu0 %v2430_v5  ;;  %v3163_v23 = vld [vmem:[#allocation3 + $0x5d0] sm:$0xf0]  ;;  %v3807_v24 = vld [vmem:[#allocation3 + $0x6c4] sm:$0xf]  ;;  %v3038_v28 = vor.u32 %v3743_v19, %v3035_v20 }
  0x6e   :  { %v3291_v25 = vld [vmem:[#allocation3 + $0x6d0] sm:$0xf0]  ;;  %1756 = vmatpush.bf16.msra.mxu1 %v2558_v9  ;;  %v3839_v26 = vld [vmem:[#allocation3 + $0x7c4] sm:$0xf]  ;;  %v3166_v29 = vor.u32 %v3775_v21, %v3163_v23 }
  0x6f   :  { %1770 = vmatpush.bf16.msra.mxu2 %v2686_v11  ;;  %v3419_v27 = vld [vmem:[#allocation3 + $0x7d0] sm:$0xf0]  ;;  %v3294_v30 = vor.u32 %v3807_v24, %v3291_v25  ;;  %v3739_v31 = vld [vmem:[#allocation3 + $0x4a4] sm:$0xf] }
  0x70   :  { %1784 = vmatpush.bf16.msra.mxu3 %v2814_v14  ;;  %v3019_v32 = vld [vmem:[#allocation3 + $0x4b0] sm:$0xf0]  ;;  %v3771_v33 = vld [vmem:[#allocation3 + $0x5a4] sm:$0xf]  ;;  %v3422_v34 = vor.u32 %v3839_v26, %v3419_v27  ;;  %1743 = vmatmul.bf16.vlgmr.msra.gmra.mxu0 %v3987_v58 }
  0x71   :  { %1791 = vmatpush.bf16.msrb.mxu0 %v3054_v15  ;;  %v3147_v35 = vld [vmem:[#allocation3 + $0x5b0] sm:$0xf0]  ;;  %v3803_v36 = vld [vmem:[#allocation3 + $0x6a4] sm:$0xf]  ;;  %1757 = vmatmul.bf16.vlgmr.msra.gmra.mxu1 %v4005_v10  ;;  %v3022_v41 = vor.u32 %v3739_v31, %v3019_v32 }
  0x72   :  { %1805 = vmatpush.bf16.msrb.mxu1 %v3182_v16  ;;  %v3275_v37 = vld [vmem:[#allocation3 + $0x6b0] sm:$0xf0]  ;;  %v3835_v38 = vld [vmem:[#allocation3 + $0x7a4] sm:$0xf]  ;;  %1771 = vmatmul.bf16.vlgmr.msra.gmra.mxu2 %v3992_v1  ;;  %v3150_v42 = vor.u32 %v3771_v33, %v3147_v35 }
  0x73   :  { %1819 = vmatpush.bf16.msrb.mxu2 %v3310_v18  ;;  %v3403_v40 = vld [vmem:[#allocation3 + $0x7b0] sm:$0xf0]  ;;  %1785 = vmatmul.bf16.vlgmr.msra.gmra.mxu3 %v4010_v17  ;;  %v3278_v45 = vor.u32 %v3803_v36, %v3275_v37  ;;  %v3735_v46 = vld [vmem:[#allocation3 + $0x484] sm:$0xf] }
  0x74   :  { %1833 = vmatpush.bf16.msrb.mxu3 %v3438_v22  ;;  %v3003_v48 = vld [vmem:[#allocation3 + $0x490] sm:$0xf0]  ;;  %v3767_v49 = vld [vmem:[#allocation3 + $0x584] sm:$0xf]  ;;  %v3406_v50 = vor.u32 %v3835_v38, %v3403_v40 }
  0x75   :  { %1792 = vmatpush.bf16.msrb.mxu0 %v3038_v28  ;;  %v3131_v51 = vld [vmem:[#allocation3 + $0x590] sm:$0xf0]  ;;  %v3799_v52 = vld [vmem:[#allocation3 + $0x684] sm:$0xf]  ;;  %v3006_v56 = vor.u32 %v3735_v46, %v3003_v48  ;;  %v2545_v48 = vld [vmem:[#allocation3 + $0xe8] sm:$0xf] }
  0x76   :  { %1806 = vmatpush.bf16.msrb.mxu1 %v3166_v29  ;;  %v3259_v53 = vld [vmem:[#allocation3 + $0x690] sm:$0xf0]  ;;  %v3831_v54 = vld [vmem:[#allocation3 + $0x784] sm:$0xf]  ;;  %v3134_v57 = vor.u32 %v3767_v49, %v3131_v51  ;;  %v3622_v49 = vld [vmem:[#allocation3 + $0xf4] sm:$0xf0] }
  0x77   :  { %1820 = vmatpush.bf16.msrb.mxu2 %v3294_v30  ;;  %v3387_v55 = vld [vmem:[#allocation3 + $0x790] sm:$0xf0]  ;;  %v3262_v59 = vor.u32 %v3799_v52, %v3259_v53  ;;  %v3731_v60 = vld [vmem:[#allocation3 + $0x464] sm:$0xf]  ;;  %v3654_v52 = vld [vmem:[#allocation3 + $0x1f4] sm:$0xf0] }
  0x78   :  { %1834 = vmatpush.bf16.msrb.mxu3 %v3422_v34  ;;  %v2987_v61 = vld [vmem:[#allocation3 + $0x470] sm:$0xf0]  ;;  %v3763_v62 = vld [vmem:[#allocation3 + $0x564] sm:$0xf]  ;;  %v3390_v63 = vor.u32 %v3831_v54, %v3387_v55  ;;  %v2801_v53 = vld [vmem:[#allocation3 + $0x2e8] sm:$0xf] }
  0x79   :  { %1793 = vmatpush.bf16.msrb.mxu0 %v3022_v41  ;;  %v3115_v0 = vld [vmem:[#allocation3 + $0x570] sm:$0xf0]  ;;  %v3795_v2 = vld [vmem:[#allocation3 + $0x664] sm:$0xf]  ;;  %v2990_v6 = vor.u32 %v3731_v60, %v2987_v61  ;;  %v3686_v54 = vld [vmem:[#allocation3 + $0x2f4] sm:$0xf0]  ;;  %v2546_v61 = vor.u32 %v3622_v49, %v2545_v48 }
  0x7a   :  { %1807 = vmatpush.bf16.msrb.mxu1 %v3150_v42  ;;  %v3243_v3 = vld [vmem:[#allocation3 + $0x670] sm:$0xf0]  ;;  %v3827_v4 = vld [vmem:[#allocation3 + $0x764] sm:$0xf]  ;;  %v3118_v7 = vor.u32 %v3763_v62, %v3115_v0  ;;  %v2529_v0 = vld [vmem:[#allocation3 + $0xc8] sm:$0xf] }
  0x7b   :  { %1821 = vmatpush.bf16.msrb.mxu2 %v3278_v45  ;;  %v3371_v5 = vld [vmem:[#allocation3 + $0x770] sm:$0xf0]  ;;  %v3246_v8 = vor.u32 %v3795_v2, %v3243_v3  ;;  %v3727_v9 = vld [vmem:[#allocation3 + $0x444] sm:$0xf]  ;;  %v3618_v2 = vld [vmem:[#allocation3 + $0xd4] sm:$0xf0] }
  0x7c   :  { %1835 = vmatpush.bf16.msrb.mxu3 %v3406_v50  ;;  %v2971_v11 = vld [vmem:[#allocation3 + $0x450] sm:$0xf0]  ;;  %v3759_v12 = vld [vmem:[#allocation3 + $0x544] sm:$0xf]  ;;  %v3374_v13 = vor.u32 %v3827_v4, %v3371_v5  ;;  %v2673_v50 = vld [vmem:[#allocation3 + $0x1e8] sm:$0xf] }
  0x7d   :  { %1794 = vmatpush.bf16.msrb.mxu0 %v3006_v56  ;;  %v3099_v14 = vld [vmem:[#allocation3 + $0x550] sm:$0xf0]  ;;  %v3791_v15 = vld [vmem:[#allocation3 + $0x644] sm:$0xf]  ;;  %v2974_v20 = vor.u32 %v3727_v9, %v2971_v11  ;;  %v2674_v62 = vor.u32 %v3654_v52, %v2673_v50  ;;  %v2657_v3 = vld [vmem:[#allocation3 + $0x1c8] sm:$0xf]  ;;  %v2530_v11 = vor.u32 %v3618_v2, %v2529_v0 }
  0x7e   :  { %1808 = vmatpush.bf16.msrb.mxu1 %v3134_v57  ;;  %v3227_v16 = vld [vmem:[#allocation3 + $0x650] sm:$0xf0]  ;;  %v3823_v18 = vld [vmem:[#allocation3 + $0x744] sm:$0xf]  ;;  %v3102_v21 = vor.u32 %v3759_v12, %v3099_v14  ;;  %v2929_v57 = vld [vmem:[#allocation3 + $0x3e8] sm:$0xf] }
  0x7f   :  { %1822 = vmatpush.bf16.msrb.mxu2 %v3262_v59  ;;  %v3355_v19 = vld [vmem:[#allocation3 + $0x750] sm:$0xf0]  ;;  %v3230_v22 = vor.u32 %v3791_v15, %v3227_v16  ;;  %v3723_v23 = vld [vmem:[#allocation3 + $0x424] sm:$0xf]  ;;  %v3718_v59 = vld [vmem:[#allocation3 + $0x3f4] sm:$0xf0] }
  0x80   :  { %1836 = vmatpush.bf16.msrb.mxu3 %v3390_v63  ;;  %v2955_v24 = vld [vmem:[#allocation3 + $0x430] sm:$0xf0]  ;;  %v3755_v25 = vld [vmem:[#allocation3 + $0x524] sm:$0xf]  ;;  %v3358_v26 = vor.u32 %v3823_v18, %v3355_v19  ;;  %v2802_v63 = vor.u32 %v3686_v54, %v2801_v53  ;;  %v2930_v4 = vor.u32 %v3718_v59, %v2929_v57  ;;  %v3650_v5 = vld [vmem:[#allocation3 + $0x1d4] sm:$0xf0] }
  0x81   :  { %1795 = vmatpush.bf16.msrb.mxu0 %v2990_v6  ;;  %v3083_v27 = vld [vmem:[#allocation3 + $0x530] sm:$0xf0]  ;;  %v3787_v28 = vld [vmem:[#allocation3 + $0x624] sm:$0xf]  ;;  %v2958_v32 = vor.u32 %v3723_v23, %v2955_v24  ;;  %v2785_v6 = vld [vmem:[#allocation3 + $0x2c8] sm:$0xf]  ;;  %v2658_v12 = vor.u32 %v3650_v5, %v2657_v3 }
  0x82   :  { %1809 = vmatpush.bf16.msrb.mxu1 %v3118_v7  ;;  %v3211_v29 = vld [vmem:[#allocation3 + $0x630] sm:$0xf0]  ;;  %v3819_v30 = vld [vmem:[#allocation3 + $0x724] sm:$0xf]  ;;  %v3086_v35 = vor.u32 %v3755_v25, %v3083_v27  ;;  %v3682_v7 = vld [vmem:[#allocation3 + $0x2d4] sm:$0xf0] }
  0x83   :  { %1823 = vmatpush.bf16.msrb.mxu2 %v3246_v8  ;;  %v3339_v31 = vld [vmem:[#allocation3 + $0x730] sm:$0xf0]  ;;  %v3719_v33 = vld [vmem:[#allocation3 + $0x404] sm:$0xf]  ;;  %v3214_v36 = vor.u32 %v3787_v28, %v3211_v29  ;;  %v2913_v8 = vld [vmem:[#allocation3 + $0x3c8] sm:$0xf] }
  0x84   :  { %1837 = vmatpush.bf16.msrb.mxu3 %v3374_v13  ;;  %v2939_v34 = vld [vmem:[#allocation3 + $0x410] sm:$0xf0]  ;;  %v3751_v37 = vld [vmem:[#allocation3 + $0x504] sm:$0xf]  ;;  %v3342_v41 = vor.u32 %v3819_v30, %v3339_v31  ;;  %v3714_v9 = vld [vmem:[#allocation3 + $0x3d4] sm:$0xf0]  ;;  %v2786_v13 = vor.u32 %v3682_v7, %v2785_v6 }
  0x85   :  { %1796 = vmatpush.bf16.msrb.mxu0 %v2974_v20  ;;  %v3067_v38 = vld [vmem:[#allocation3 + $0x510] sm:$0xf0]  ;;  %v3783_v40 = vld [vmem:[#allocation3 + $0x604] sm:$0xf]  ;;  %v2942_v51 = vor.u32 %v3719_v33, %v2939_v34  ;;  %v2513_v14 = vld [vmem:[#allocation3 + $0xa8] sm:$0xf]  ;;  %v2914_v18 = vor.u32 %v3714_v9, %v2913_v8 }
  0x86   :  { %1810 = vmatpush.bf16.msrb.mxu1 %v3102_v21  ;;  %v3195_v42 = vld [vmem:[#allocation3 + $0x610] sm:$0xf0]  ;;  %v3815_v45 = vld [vmem:[#allocation3 + $0x704] sm:$0xf]  ;;  %v3070_v55 = vor.u32 %v3751_v37, %v3067_v38  ;;  %v3614_v15 = vld [vmem:[#allocation3 + $0xb4] sm:$0xf0] }
  0x87   :  { %1824 = vmatpush.bf16.msrb.mxu2 %v3230_v22  ;;  %v3323_v46 = vld [vmem:[#allocation3 + $0x710] sm:$0xf0]  ;;  %v3198_v56 = vor.u32 %v3783_v40, %v3195_v42  ;;  %v2641_v16 = vld [vmem:[#allocation3 + $0x1a8] sm:$0xf]  ;;  %v3646_v19 = vld [vmem:[#allocation3 + $0x1b4] sm:$0xf0]  ;;  %v2514_v24 = vor.u32 %v3614_v15, %v2513_v14 }
  0x88   :  { %1838 = vmatpush.bf16.msrb.mxu3 %v3358_v26  ;;  %v3326_v60 = vor.u32 %v3815_v45, %v3323_v46  ;;  %v2769_v20 = vld [vmem:[#allocation3 + $0x2a8] sm:$0xf]  ;;  %v3678_v21 = vld [vmem:[#allocation3 + $0x2b4] sm:$0xf0]  ;;  %v2642_v25 = vor.u32 %v3646_v19, %v2641_v16 }
  0x89   :  { %1797 = vmatpush.bf16.msrb.mxu0 %v2958_v32  ;;  %v2897_v22 = vld [vmem:[#allocation3 + $0x3a8] sm:$0xf]  ;;  %v3710_v23 = vld [vmem:[#allocation3 + $0x3b4] sm:$0xf0]  ;;  %v2770_v26 = vor.u32 %v3678_v21, %v2769_v20 }
  0x8a   :  { %1811 = vmatpush.bf16.msrb.mxu1 %v3086_v35  ;;  %v2497_v27 = vld [vmem:[#allocation3 + $0x88] sm:$0xf]  ;;  %v3610_v28 = vld [vmem:[#allocation3 + $0x94] sm:$0xf0]  ;;  %v2898_v30 = vor.u32 %v3710_v23, %v2897_v22 }
  0x8b   :  { %1825 = vmatpush.bf16.msrb.mxu2 %v3214_v36  ;;  %v2625_v29 = vld [vmem:[#allocation3 + $0x188] sm:$0xf]  ;;  %v3642_v31 = vld [vmem:[#allocation3 + $0x194] sm:$0xf0]  ;;  %v2498_v36 = vor.u32 %v3610_v28, %v2497_v27 }
  0x8c   :  { %1839 = vmatpush.bf16.msrb.mxu3 %v3342_v41  ;;  %v2753_v32 = vld [vmem:[#allocation3 + $0x288] sm:$0xf]  ;;  %v3674_v33 = vld [vmem:[#allocation3 + $0x294] sm:$0xf0]  ;;  %v2626_v37 = vor.u32 %v3642_v31, %v2625_v29 }
  0x8d   :  { %1798 = vmatpush.bf16.msrb.mxu0 %v2942_v51  ;;  %v2881_v34 = vld [vmem:[#allocation3 + $0x388] sm:$0xf]  ;;  %v3706_v35 = vld [vmem:[#allocation3 + $0x394] sm:$0xf0]  ;;  %v2754_v38 = vor.u32 %v3674_v33, %v2753_v32 }
  0x8e   :  { %1812 = vmatpush.bf16.msrb.mxu1 %v3070_v55  ;;  %v2481_v40 = vld [vmem:[#allocation3 + $0x68] sm:$0xf]  ;;  %v3606_v41 = vld [vmem:[#allocation3 + $0x74] sm:$0xf0]  ;;  %v2882_v45 = vor.u32 %v3706_v35, %v2881_v34 }
  0x8f   :  { %1826 = vmatpush.bf16.msrb.mxu2 %v3198_v56  ;;  %v2609_v42 = vld [vmem:[#allocation3 + $0x168] sm:$0xf]  ;;  %v3638_v46 = vld [vmem:[#allocation3 + $0x174] sm:$0xf0]  ;;  %v2482_v52 = vor.u32 %v3606_v41, %v2481_v40 }
  0x90   :  { %1840 = vmatpush.bf16.msrb.mxu3 %v3326_v60  ;;  %1799 = vmatmul.bf16.vlgmr.msrb.gmra.mxu0 %v4038_v39  ;;  %v2737_v48 = vld [vmem:[#allocation3 + $0x268] sm:$0xf]  ;;  %v3670_v49 = vld [vmem:[#allocation3 + $0x274] sm:$0xf0]  ;;  %v2610_v53 = vor.u32 %v3638_v46, %v2609_v42 }
  0x91   :  { %1847 = vmatpush.bf16.msra.mxu0 %v2546_v61  ;;  %1813 = vmatmul.bf16.vlgmr.msrb.gmra.mxu1 %v4042_v44  ;;  %v2865_v50 = vld [vmem:[#allocation3 + $0x368] sm:$0xf]  ;;  %v3702_v51 = vld [vmem:[#allocation3 + $0x374] sm:$0xf0]  ;;  %v2738_v54 = vor.u32 %v3670_v49, %v2737_v48 }
  0x92   :  { %1861 = vmatpush.bf16.msra.mxu1 %v2674_v62  ;;  %1827 = vmatmul.bf16.vlgmr.msrb.gmra.mxu2 %v4040_v43  ;;  %v2465_v55 = vld [vmem:[#allocation3 + $0x48] sm:$0xf]  ;;  %v3602_v56 = vld [vmem:[#allocation3 + $0x54] sm:$0xf0]  ;;  %v2866_v59 = vor.u32 %v3702_v51, %v2865_v50 }
  0x93   :  { %1875 = vmatpush.bf16.msra.mxu2 %v2802_v63  ;;  %1841 = vmatmul.bf16.vlgmr.msrb.gmra.mxu3 %v4044_v47  ;;  %v2593_v57 = vld [vmem:[#allocation3 + $0x148] sm:$0xf]  ;;  %v3634_v60 = vld [vmem:[#allocation3 + $0x154] sm:$0xf0]  ;;  %v2466_v2 = vor.u32 %v3602_v56, %v2465_v55 }
  0x94   :  { %1889 = vmatpush.bf16.msra.mxu3 %v2930_v4  ;;  %v2721_v61 = vld [vmem:[#allocation3 + $0x248] sm:$0xf]  ;;  %v3666_v62 = vld [vmem:[#allocation3 + $0x254] sm:$0xf0]  ;;  %v2594_v3 = vor.u32 %v3634_v60, %v2593_v57 }
  0x95   :  { %1848 = vmatpush.bf16.msra.mxu0 %v2530_v11  ;;  %v2849_v63 = vld [vmem:[#allocation3 + $0x348] sm:$0xf]  ;;  %v3698_v0 = vld [vmem:[#allocation3 + $0x354] sm:$0xf0]  ;;  %v2722_v4 = vor.u32 %v3666_v62, %v2721_v61 }
  0x96   :  { %1862 = vmatpush.bf16.msra.mxu1 %v2658_v12  ;;  %v2449_v5 = vld [vmem:[#allocation3 + $0x28] sm:$0xf]  ;;  %v3598_v6 = vld [vmem:[#allocation3 + $0x34] sm:$0xf0]  ;;  %v2850_v8 = vor.u32 %v3698_v0, %v2849_v63 }
  0x97   :  { %1876 = vmatpush.bf16.msra.mxu2 %v2786_v13  ;;  %v2577_v7 = vld [vmem:[#allocation3 + $0x128] sm:$0xf]  ;;  %v3630_v9 = vld [vmem:[#allocation3 + $0x134] sm:$0xf0]  ;;  %v2450_v15 = vor.u32 %v3598_v6, %v2449_v5 }
  0x98   :  { %1890 = vmatpush.bf16.msra.mxu3 %v2914_v18  ;;  %v2705_v11 = vld [vmem:[#allocation3 + $0x228] sm:$0xf]  ;;  %v3662_v12 = vld [vmem:[#allocation3 + $0x234] sm:$0xf0]  ;;  %v2578_v19 = vor.u32 %v3630_v9, %v2577_v7 }
  0x99   :  { %1849 = vmatpush.bf16.msra.mxu0 %v2514_v24  ;;  %v2833_v13 = vld [vmem:[#allocation3 + $0x328] sm:$0xf]  ;;  %v3694_v14 = vld [vmem:[#allocation3 + $0x334] sm:$0xf0]  ;;  %v2706_v20 = vor.u32 %v3662_v12, %v2705_v11 }
  0x9a   :  { %1863 = vmatpush.bf16.msra.mxu1 %v2642_v25  ;;  %v2433_v16 = vld [vmem:[#allocation3 + $0x8] sm:$0xf]  ;;  %v3594_v18 = vld [vmem:[#allocation3 + $0x14] sm:$0xf0]  ;;  %v2834_v24 = vor.u32 %v3694_v14, %v2833_v13 }
  0x9b   :  { %1877 = vmatpush.bf16.msra.mxu2 %v2770_v26  ;;  %v2561_v21 = vld [vmem:[#allocation3 + $0x108] sm:$0xf]  ;;  %v3626_v22 = vld [vmem:[#allocation3 + $0x114] sm:$0xf0]  ;;  %v2434_v31 = vor.u32 %v3594_v18, %v2433_v16 }
  0x9c   :  { %1891 = vmatpush.bf16.msra.mxu3 %v2898_v30  ;;  %v2689_v23 = vld [vmem:[#allocation3 + $0x208] sm:$0xf]  ;;  %v3658_v25 = vld [vmem:[#allocation3 + $0x214] sm:$0xf0]  ;;  %v2562_v35 = vor.u32 %v3626_v22, %v2561_v21 }
  0x9d   :  { %1850 = vmatpush.bf16.msra.mxu0 %v2498_v36  ;;  %v2817_v26 = vld [vmem:[#allocation3 + $0x308] sm:$0xf]  ;;  %v3690_v27 = vld [vmem:[#allocation3 + $0x314] sm:$0xf0]  ;;  %v2690_v36 = vor.u32 %v3658_v25, %v2689_v23 }
  0x9e   :  { %1864 = vmatpush.bf16.msra.mxu1 %v2626_v37  ;;  %v3057_v28 = vld [vmem:[#allocation3 + $0x4e8] sm:$0xf]  ;;  %v3750_v29 = vld [vmem:[#allocation3 + $0x4f4] sm:$0xf0]  ;;  %v2818_v40 = vor.u32 %v3690_v27, %v2817_v26 }
  0x9f   :  { %1878 = vmatpush.bf16.msra.mxu2 %v2754_v38  ;;  %v3185_v30 = vld [vmem:[#allocation3 + $0x5e8] sm:$0xf]  ;;  %v3782_v32 = vld [vmem:[#allocation3 + $0x5f4] sm:$0xf0]  ;;  %v3058_v41 = vor.u32 %v3750_v29, %v3057_v28 }
  0xa0   :  { %1892 = vmatpush.bf16.msra.mxu3 %v2882_v45  ;;  %v3313_v33 = vld [vmem:[#allocation3 + $0x6e8] sm:$0xf]  ;;  %v3814_v34 = vld [vmem:[#allocation3 + $0x6f4] sm:$0xf0]  ;;  %v3186_v42 = vor.u32 %v3782_v32, %v3185_v30 }
  0xa1   :  { %1851 = vmatpush.bf16.msra.mxu0 %v2482_v52  ;;  %v3441_v37 = vld [vmem:[#allocation3 + $0x7e8] sm:$0xf]  ;;  %v3846_v38 = vld [vmem:[#allocation3 + $0x7f4] sm:$0xf0]  ;;  %v3314_v45 = vor.u32 %v3814_v34, %v3313_v33 }
  0xa2   :  { %1865 = vmatpush.bf16.msra.mxu1 %v2610_v53  ;;  %v3041_v46 = vld [vmem:[#allocation3 + $0x4c8] sm:$0xf]  ;;  %v3746_v48 = vld [vmem:[#allocation3 + $0x4d4] sm:$0xf0]  ;;  %v3442_v50 = vor.u32 %v3846_v38, %v3441_v37 }
  0xa3   :  { %1879 = vmatpush.bf16.msra.mxu2 %v2738_v54  ;;  %v3169_v49 = vld [vmem:[#allocation3 + $0x5c8] sm:$0xf]  ;;  %v3778_v51 = vld [vmem:[#allocation3 + $0x5d4] sm:$0xf0]  ;;  %v3042_v56 = vor.u32 %v3746_v48, %v3041_v46 }
  0xa4   :  { %1893 = vmatpush.bf16.msra.mxu3 %v2866_v59  ;;  %v3297_v52 = vld [vmem:[#allocation3 + $0x6c8] sm:$0xf]  ;;  %v3810_v53 = vld [vmem:[#allocation3 + $0x6d4] sm:$0xf0]  ;;  %v3170_v57 = vor.u32 %v3778_v51, %v3169_v49 }
  0xa5   :  { %1852 = vmatpush.bf16.msra.mxu0 %v2466_v2  ;;  %v3425_v54 = vld [vmem:[#allocation3 + $0x7c8] sm:$0xf]  ;;  %v3842_v55 = vld [vmem:[#allocation3 + $0x7d4] sm:$0xf0]  ;;  %v3298_v59 = vor.u32 %v3810_v53, %v3297_v52 }
  0xa6   :  { %1866 = vmatpush.bf16.msra.mxu1 %v2594_v3  ;;  %v3025_v60 = vld [vmem:[#allocation3 + $0x4a8] sm:$0xf]  ;;  %v3742_v61 = vld [vmem:[#allocation3 + $0x4b4] sm:$0xf0]  ;;  %v3426_v63 = vor.u32 %v3842_v55, %v3425_v54 }
  0xa7   :  { %1880 = vmatpush.bf16.msra.mxu2 %v2722_v4  ;;  %v3153_v62 = vld [vmem:[#allocation3 + $0x5a8] sm:$0xf]  ;;  %v3774_v0 = vld [vmem:[#allocation3 + $0x5b4] sm:$0xf0]  ;;  %v3026_v6 = vor.u32 %v3742_v61, %v3025_v60 }
  0xa8   :  { %1894 = vmatpush.bf16.msra.mxu3 %v2850_v8  ;;  %v3281_v2 = vld [vmem:[#allocation3 + $0x6a8] sm:$0xf]  ;;  %v3806_v3 = vld [vmem:[#allocation3 + $0x6b4] sm:$0xf0]  ;;  %v3154_v7 = vor.u32 %v3774_v0, %v3153_v62 }
  0xa9   :  { %1853 = vmatpush.bf16.msra.mxu0 %v2450_v15  ;;  %v3409_v4 = vld [vmem:[#allocation3 + $0x7a8] sm:$0xf]  ;;  %v3838_v5 = vld [vmem:[#allocation3 + $0x7b4] sm:$0xf0]  ;;  %v3282_v8 = vor.u32 %v3806_v3, %v3281_v2 }
  0xaa   :  { %1867 = vmatpush.bf16.msra.mxu1 %v2578_v19  ;;  %v3009_v9 = vld [vmem:[#allocation3 + $0x488] sm:$0xf]  ;;  %v3738_v11 = vld [vmem:[#allocation3 + $0x494] sm:$0xf0]  ;;  %v3410_v13 = vor.u32 %v3838_v5, %v3409_v4 }
  0xab   :  { %1881 = vmatpush.bf16.msra.mxu2 %v2706_v20  ;;  %v3137_v12 = vld [vmem:[#allocation3 + $0x588] sm:$0xf]  ;;  %v3770_v14 = vld [vmem:[#allocation3 + $0x594] sm:$0xf0]  ;;  %v3010_v20 = vor.u32 %v3738_v11, %v3009_v9  ;;  %v3620_v11 = vld [vmem:[#allocation3 + $0xec] sm:$0xf] }
  0xac   :  { %1895 = vmatpush.bf16.msra.mxu3 %v2834_v24  ;;  %v3265_v15 = vld [vmem:[#allocation3 + $0x688] sm:$0xf]  ;;  %v3802_v16 = vld [vmem:[#allocation3 + $0x694] sm:$0xf0]  ;;  %v3138_v21 = vor.u32 %v3770_v14, %v3137_v12  ;;  %v2547_v12 = vld [vmem:[#allocation3 + $0xf8] sm:$0xf0] }
  0xad   :  { %1854 = vmatpush.bf16.msra.mxu0 %v2434_v31  ;;  %v3393_v18 = vld [vmem:[#allocation3 + $0x788] sm:$0xf]  ;;  %v3834_v19 = vld [vmem:[#allocation3 + $0x794] sm:$0xf0]  ;;  %v3266_v22 = vor.u32 %v3802_v16, %v3265_v15  ;;  %v2675_v15 = vld [vmem:[#allocation3 + $0x1f8] sm:$0xf0] }
  0xae   :  { %1868 = vmatpush.bf16.msra.mxu1 %v2562_v35  ;;  %v2993_v23 = vld [vmem:[#allocation3 + $0x468] sm:$0xf]  ;;  %v3734_v24 = vld [vmem:[#allocation3 + $0x474] sm:$0xf0]  ;;  %v3394_v26 = vor.u32 %v3834_v19, %v3393_v18  ;;  %v3684_v16 = vld [vmem:[#allocation3 + $0x2ec] sm:$0xf] }
  0xaf   :  { %1882 = vmatpush.bf16.msra.mxu2 %v2690_v36  ;;  %v3121_v25 = vld [vmem:[#allocation3 + $0x568] sm:$0xf]  ;;  %v3766_v27 = vld [vmem:[#allocation3 + $0x574] sm:$0xf0]  ;;  %v2994_v32 = vor.u32 %v3734_v24, %v2993_v23  ;;  %v2803_v18 = vld [vmem:[#allocation3 + $0x2f8] sm:$0xf0]  ;;  %v2550_v24 = vor.u32 %v3620_v11, %v2547_v12 }
  0xb0   :  { %1896 = vmatpush.bf16.msra.mxu3 %v2818_v40  ;;  %1855 = vmatmul.bf16.vlgmr.msra.gmra.mxu0 %v3987_v58  ;;  %v3249_v28 = vld [vmem:[#allocation3 + $0x668] sm:$0xf]  ;;  %v3798_v29 = vld [vmem:[#allocation3 + $0x674] sm:$0xf0]  ;;  %v3122_v33 = vor.u32 %v3766_v27, %v3121_v25  ;;  %v3616_v27 = vld [vmem:[#allocation3 + $0xcc] sm:$0xf] }
  0xb1   :  { %1903 = vmatpush.bf16.msrb.mxu0 %v3058_v41  ;;  %1869 = vmatmul.bf16.vlgmr.msra.gmra.mxu1 %v4005_v10  ;;  %v3377_v30 = vld [vmem:[#allocation3 + $0x768] sm:$0xf]  ;;  %v3830_v31 = vld [vmem:[#allocation3 + $0x774] sm:$0xf0]  ;;  %v3250_v34 = vor.u32 %v3798_v29, %v3249_v28  ;;  %v2531_v28 = vld [vmem:[#allocation3 + $0xd8] sm:$0xf0] }
  0xb2   :  { %1917 = vmatpush.bf16.msrb.mxu1 %v3186_v42  ;;  %1883 = vmatmul.bf16.vlgmr.msra.gmra.mxu2 %v3992_v1  ;;  %v2977_v35 = vld [vmem:[#allocation3 + $0x448] sm:$0xf]  ;;  %v3730_v36 = vld [vmem:[#allocation3 + $0x454] sm:$0xf0]  ;;  %v3378_v38 = vor.u32 %v3830_v31, %v3377_v30  ;;  %v3648_v29 = vld [vmem:[#allocation3 + $0x1cc] sm:$0xf] }
  0xb3   :  { %1931 = vmatpush.bf16.msrb.mxu2 %v3314_v45  ;;  %1897 = vmatmul.bf16.vlgmr.msra.gmra.mxu3 %v4010_v17  ;;  %v3105_v37 = vld [vmem:[#allocation3 + $0x548] sm:$0xf]  ;;  %v3762_v40 = vld [vmem:[#allocation3 + $0x554] sm:$0xf0]  ;;  %v2978_v48 = vor.u32 %v3730_v36, %v2977_v35  ;;  %v2659_v31 = vld [vmem:[#allocation3 + $0x1d8] sm:$0xf0]  ;;  %v2534_v36 = vor.u32 %v3616_v27, %v2531_v28 }
  0xb4   :  { %1945 = vmatpush.bf16.msrb.mxu3 %v3442_v50  ;;  %v3233_v41 = vld [vmem:[#allocation3 + $0x648] sm:$0xf]  ;;  %v3794_v42 = vld [vmem:[#allocation3 + $0x654] sm:$0xf0]  ;;  %v3106_v49 = vor.u32 %v3762_v40, %v3105_v37  ;;  %v2915_v35 = vld [vmem:[#allocation3 + $0x3d8] sm:$0xf0]  ;;  %v2662_v37 = vor.u32 %v3648_v29, %v2659_v31 }
  0xb5   :  { %1904 = vmatpush.bf16.msrb.mxu0 %v3042_v56  ;;  %v3361_v45 = vld [vmem:[#allocation3 + $0x748] sm:$0xf]  ;;  %v3826_v46 = vld [vmem:[#allocation3 + $0x754] sm:$0xf0]  ;;  %v3234_v50 = vor.u32 %v3794_v42, %v3233_v41  ;;  %v3612_v40 = vld [vmem:[#allocation3 + $0xac] sm:$0xf] }
  0xb6   :  { %1918 = vmatpush.bf16.msrb.mxu1 %v3170_v57  ;;  %v2961_v51 = vld [vmem:[#allocation3 + $0x428] sm:$0xf]  ;;  %v3726_v52 = vld [vmem:[#allocation3 + $0x434] sm:$0xf0]  ;;  %v3362_v54 = vor.u32 %v3826_v46, %v3361_v45  ;;  %v2515_v41 = vld [vmem:[#allocation3 + $0xb8] sm:$0xf0] }
  0xb7   :  { %1932 = vmatpush.bf16.msrb.mxu2 %v3298_v59  ;;  %v3089_v53 = vld [vmem:[#allocation3 + $0x528] sm:$0xf]  ;;  %v3758_v55 = vld [vmem:[#allocation3 + $0x534] sm:$0xf0]  ;;  %v2962_v61 = vor.u32 %v3726_v52, %v2961_v51  ;;  %v3644_v42 = vld [vmem:[#allocation3 + $0x1ac] sm:$0xf]  ;;  %v2518_v52 = vor.u32 %v3612_v40, %v2515_v41 }
  0xb8   :  { %1946 = vmatpush.bf16.msrb.mxu3 %v3426_v63  ;;  %v3217_v56 = vld [vmem:[#allocation3 + $0x628] sm:$0xf]  ;;  %v3790_v57 = vld [vmem:[#allocation3 + $0x634] sm:$0xf0]  ;;  %v3090_v0 = vor.u32 %v3758_v55, %v3089_v53  ;;  %v2643_v46 = vld [vmem:[#allocation3 + $0x1b8] sm:$0xf0] }
  0xb9   :  { %1905 = vmatpush.bf16.msrb.mxu0 %v3026_v6  ;;  %v3345_v59 = vld [vmem:[#allocation3 + $0x728] sm:$0xf]  ;;  %v3822_v60 = vld [vmem:[#allocation3 + $0x734] sm:$0xf0]  ;;  %v3218_v2 = vor.u32 %v3790_v57, %v3217_v56  ;;  %v2899_v51 = vld [vmem:[#allocation3 + $0x3b8] sm:$0xf0]  ;;  %v2646_v53 = vor.u32 %v3644_v42, %v2643_v46 }
  0xba   :  { %1919 = vmatpush.bf16.msrb.mxu1 %v3154_v7  ;;  %v2945_v62 = vld [vmem:[#allocation3 + $0x408] sm:$0xf]  ;;  %v3722_v63 = vld [vmem:[#allocation3 + $0x414] sm:$0xf0]  ;;  %v3346_v6 = vor.u32 %v3822_v60, %v3345_v59  ;;  %v3608_v55 = vld [vmem:[#allocation3 + $0x8c] sm:$0xf] }
  0xbb   :  { %1933 = vmatpush.bf16.msrb.mxu2 %v3282_v8  ;;  %v3073_v3 = vld [vmem:[#allocation3 + $0x508] sm:$0xf]  ;;  %v3754_v4 = vld [vmem:[#allocation3 + $0x514] sm:$0xf0]  ;;  %v2946_v14 = vor.u32 %v3722_v63, %v2945_v62  ;;  %v2499_v56 = vld [vmem:[#allocation3 + $0x98] sm:$0xf0] }
  0xbc   :  { %1947 = vmatpush.bf16.msrb.mxu3 %v3410_v13  ;;  %v3201_v5 = vld [vmem:[#allocation3 + $0x608] sm:$0xf]  ;;  %v3786_v7 = vld [vmem:[#allocation3 + $0x614] sm:$0xf0]  ;;  %v3652_v13 = vld [vmem:[#allocation3 + $0x1ec] sm:$0xf]  ;;  %v3074_v19 = vor.u32 %v3754_v4, %v3073_v3  ;;  %v4066_v3 = vpop.f32.mrf.mxu0 }
  0xbd   :  { %1906 = vmatpush.bf16.msrb.mxu0 %v3010_v20  ;;  %v3329_v8 = vld [vmem:[#allocation3 + $0x708] sm:$0xf]  ;;  %v3818_v9 = vld [vmem:[#allocation3 + $0x714] sm:$0xf0]  ;;  %v3202_v20 = vor.u32 %v3786_v7, %v3201_v5  ;;  %v2678_v25 = vor.u32 %v3652_v13, %v2675_v15  ;;  %v3640_v57 = vld [vmem:[#allocation3 + $0x18c] sm:$0xf] }
  0xbe   :  { %1920 = vmatpush.bf16.msrb.mxu1 %v3138_v21  ;;  %v3716_v21 = vld [vmem:[#allocation3 + $0x3ec] sm:$0xf]  ;;  %v3330_v23 = vor.u32 %v3818_v9, %v3329_v8  ;;  %v2627_v60 = vld [vmem:[#allocation3 + $0x198] sm:$0xf0]  ;;  %v4068_v9 = vpop.f32.mrf.mxu1 }
  0xbf   :  { %1934 = vmatpush.bf16.msrb.mxu2 %v3266_v22  ;;  %v2931_v22 = vld [vmem:[#allocation3 + $0x3f8] sm:$0xf0]  ;;  %v3704_v63 = vld [vmem:[#allocation3 + $0x38c] sm:$0xf]  ;;  %v2630_v4 = vor.u32 %v3640_v57, %v2627_v60 }
  0xc0   :  { %1948 = vmatpush.bf16.msrb.mxu3 %v3394_v26  ;;  %v2806_v26 = vor.u32 %v3684_v16, %v2803_v18  ;;  %v2934_v30 = vor.u32 %v3716_v21, %v2931_v22  ;;  %v2755_v62 = vld [vmem:[#allocation3 + $0x298] sm:$0xf0]  ;;  %v3636_v8 = vld [vmem:[#allocation3 + $0x16c] sm:$0xf] }
  0xc1   :  { %1907 = vmatpush.bf16.msrb.mxu0 %v2994_v32  ;;  %v3680_v32 = vld [vmem:[#allocation3 + $0x2cc] sm:$0xf]  ;;  %v2483_v7 = vld [vmem:[#allocation3 + $0x78] sm:$0xf0] }
  0xc2   :  { %1921 = vmatpush.bf16.msrb.mxu1 %v3122_v33  ;;  %v2787_v33 = vld [vmem:[#allocation3 + $0x2d8] sm:$0xf0]  ;;  %v3668_v13 = vld [vmem:[#allocation3 + $0x26c] sm:$0xf] }
  0xc3   :  { %1935 = vmatpush.bf16.msrb.mxu2 %v3250_v34  ;;  %v3712_v34 = vld [vmem:[#allocation3 + $0x3cc] sm:$0xf]  ;;  %v2611_v12 = vld [vmem:[#allocation3 + $0x178] sm:$0xf0] }
  0xc4   :  { %1949 = vmatpush.bf16.msrb.mxu3 %v3378_v38  ;;  %v2790_v38 = vor.u32 %v3680_v32, %v2787_v33  ;;  %v2918_v45 = vor.u32 %v3712_v34, %v2915_v35  ;;  %v3700_v15 = vld [vmem:[#allocation3 + $0x36c] sm:$0xf]  ;;  %v2867_v16 = vld [vmem:[#allocation3 + $0x378] sm:$0xf0]  ;;  %v4072_v32 = vpop.f32.mrf.mxu3 }
  0xc5   :  { %1908 = vmatpush.bf16.msrb.mxu0 %v2978_v48  ;;  %v3676_v48 = vld [vmem:[#allocation3 + $0x2ac] sm:$0xf]  ;;  %v2467_v22 = vld [vmem:[#allocation3 + $0x58] sm:$0xf0] }
  0xc6   :  { %1922 = vmatpush.bf16.msrb.mxu1 %v3106_v49  ;;  %v2771_v49 = vld [vmem:[#allocation3 + $0x2b8] sm:$0xf0]  ;;  %v3600_v21 = vld [vmem:[#allocation3 + $0x4c] sm:$0xf] }
  0xc7   :  { %1936 = vmatpush.bf16.msrb.mxu2 %v3234_v50  ;;  %v3708_v50 = vld [vmem:[#allocation3 + $0x3ac] sm:$0xf]  ;;  %v2723_v27 = vld [vmem:[#allocation3 + $0x258] sm:$0xf0]  ;;  %v2470_v31 = vor.u32 %v3600_v21, %v2467_v22 }
  0xc8   :  { %1950 = vmatpush.bf16.msrb.mxu3 %v3362_v54  ;;  %v2774_v54 = vor.u32 %v3676_v48, %v2771_v49  ;;  %v2902_v59 = vor.u32 %v3708_v50, %v2899_v51  ;;  %v3696_v28 = vld [vmem:[#allocation3 + $0x34c] sm:$0xf]  ;;  %v2851_v29 = vld [vmem:[#allocation3 + $0x358] sm:$0xf0]  ;;  %v4076_v49 = vpop.f32.mrf.mxu1 }
  0xc9   :  { %1909 = vmatpush.bf16.msrb.mxu0 %v2962_v61  ;;  %v3672_v61 = vld [vmem:[#allocation3 + $0x28c] sm:$0xf]  ;;  %v2579_v40 = vld [vmem:[#allocation3 + $0x138] sm:$0xf0] }
  0xca   :  { %1923 = vmatpush.bf16.msrb.mxu1 %v3090_v0  ;;  %v2883_v0 = vld [vmem:[#allocation3 + $0x398] sm:$0xf0]  ;;  %v2758_v5 = vor.u32 %v3672_v61, %v2755_v62  ;;  %v3596_v35 = vld [vmem:[#allocation3 + $0x2c] sm:$0xf] }
  0xcb   :  { %1937 = vmatpush.bf16.msrb.mxu2 %v3218_v2  ;;  %v2502_v2 = vor.u32 %v3608_v55, %v2499_v56  ;;  %v2886_v11 = vor.u32 %v3704_v63, %v2883_v0  ;;  %v3660_v41 = vld [vmem:[#allocation3 + $0x22c] sm:$0xf]  ;;  %v2707_v42 = vld [vmem:[#allocation3 + $0x238] sm:$0xf0] }
  0xcc   :  { %1951 = vmatpush.bf16.msrb.mxu3 %v3346_v6  ;;  %v3604_v6 = vld [vmem:[#allocation3 + $0x6c] sm:$0xf]  ;;  %v2835_v48 = vld [vmem:[#allocation3 + $0x338] sm:$0xf0] }
  0xcd   :  { %1910 = vmatpush.bf16.msrb.mxu0 %v2946_v14  ;;  %v2739_v14 = vld [vmem:[#allocation3 + $0x278] sm:$0xf0]  ;;  %v2486_v18 = vor.u32 %v3604_v6, %v2483_v7  ;;  %v3692_v46 = vld [vmem:[#allocation3 + $0x32c] sm:$0xf] }
  0xce   :  { %1924 = vmatpush.bf16.msrb.mxu1 %v3074_v19  ;;  %v2614_v19 = vor.u32 %v3636_v8, %v2611_v12  ;;  %v3592_v51 = vld [vmem:[#allocation3 + $0xc] sm:$0xf]  ;;  %v2563_v56 = vld [vmem:[#allocation3 + $0x118] sm:$0xf0] }
  0xcf   :  { %1938 = vmatpush.bf16.msrb.mxu2 %v3202_v20  ;;  %v2742_v20 = vor.u32 %v3668_v13, %v2739_v14  ;;  %v3624_v55 = vld [vmem:[#allocation3 + $0x10c] sm:$0xf]  ;;  %v2691_v60 = vld [vmem:[#allocation3 + $0x218] sm:$0xf0] }
  0xd0   :  { %1952 = vmatpush.bf16.msrb.mxu3 %v3330_v23  ;;  %1911 = vmatmul.bf16.vlgmr.msrb.gmra.mxu0 %v4038_v39  ;;  %v3632_v23 = vld [vmem:[#allocation3 + $0x14c] sm:$0xf]  ;;  %v2819_v62 = vld [vmem:[#allocation3 + $0x318] sm:$0xf0]  ;;  %v2566_v8 = vor.u32 %v3624_v55, %v2563_v56 }
  0xd1   :  { %1959 = vmatpush.bf16.msra.mxu0 %v2550_v24  ;;  %1925 = vmatmul.bf16.vlgmr.msrb.gmra.mxu1 %v4042_v44  ;;  %v2870_v24 = vor.u32 %v3700_v15, %v2867_v16  ;;  %v3656_v57 = vld [vmem:[#allocation3 + $0x20c] sm:$0xf]  ;;  %v3059_v0 = vld [vmem:[#allocation3 + $0x4f8] sm:$0xf0] }
  0xd2   :  { %1973 = vmatpush.bf16.msra.mxu1 %v2678_v25  ;;  %1939 = vmatmul.bf16.vlgmr.msrb.gmra.mxu2 %v4040_v43  ;;  %v2595_v25 = vld [vmem:[#allocation3 + $0x158] sm:$0xf0]  ;;  %v3688_v61 = vld [vmem:[#allocation3 + $0x30c] sm:$0xf] }
  0xd3   :  { %1987 = vmatpush.bf16.msra.mxu2 %v2806_v26  ;;  %1953 = vmatmul.bf16.vlgmr.msrb.gmra.mxu3 %v4044_v47  ;;  %v3664_v26 = vld [vmem:[#allocation3 + $0x24c] sm:$0xf]  ;;  %v2598_v33 = vor.u32 %v3632_v23, %v2595_v25  ;;  %v3315_v7 = vld [vmem:[#allocation3 + $0x6f8] sm:$0xf0]  ;;  %v2822_v15 = vor.u32 %v3688_v61, %v2819_v62 }
  0xd4   :  { %2001 = vmatpush.bf16.msra.mxu3 %v2934_v30  ;;  %v4070_v30 = vpop.f32.mrf.mxu2  ;;  %v2726_v34 = vor.u32 %v3664_v26, %v2723_v27  ;;  %v3748_v63 = vld [vmem:[#allocation3 + $0x4ec] sm:$0xf]  ;;  %v3443_v13 = vld [vmem:[#allocation3 + $0x7f8] sm:$0xf0] }
  0xd5   :  { %1960 = vmatpush.bf16.msra.mxu0 %v2534_v36  ;;  %v2451_v36 = vld [vmem:[#allocation3 + $0x38] sm:$0xf0]  ;;  %v3812_v6 = vld [vmem:[#allocation3 + $0x6ec] sm:$0xf]  ;;  %v3062_v16 = vor.u32 %v3748_v63, %v3059_v0 }
  0xd6   :  { %1974 = vmatpush.bf16.msra.mxu1 %v2662_v37  ;;  %v3628_v37 = vld [vmem:[#allocation3 + $0x12c] sm:$0xf]  ;;  %v2454_v50 = vor.u32 %v3596_v35, %v2451_v36  ;;  %v3043_v22 = vld [vmem:[#allocation3 + $0x4d8] sm:$0xf0] }
  0xd7   :  { %1988 = vmatpush.bf16.msra.mxu2 %v2790_v38  ;;  %v2854_v38 = vor.u32 %v3696_v28, %v2851_v29  ;;  %v3844_v12 = vld [vmem:[#allocation3 + $0x7ec] sm:$0xf]  ;;  %v3171_v25 = vld [vmem:[#allocation3 + $0x5d8] sm:$0xf0] }
  0xd8   :  { %2002 = vmatpush.bf16.msra.mxu3 %v2918_v45  ;;  %v4074_v45 = vpop.f32.mrf.mxu0  ;;  %v3744_v21 = vld [vmem:[#allocation3 + $0x4cc] sm:$0xf]  ;;  %v3299_v27 = vld [vmem:[#allocation3 + $0x6d8] sm:$0xf0] }
  0xd9   :  { %1961 = vmatpush.bf16.msra.mxu0 %v2518_v52  ;;  %v2435_v52 = vld [vmem:[#allocation3 + $0x18] sm:$0xf0]  ;;  %v3776_v23 = vld [vmem:[#allocation3 + $0x5cc] sm:$0xf] }
  0xda   :  { %1975 = vmatpush.bf16.msra.mxu1 %v2646_v53  ;;  %v2582_v53 = vor.u32 %v3628_v37, %v2579_v40  ;;  %v3808_v26 = vld [vmem:[#allocation3 + $0x6cc] sm:$0xf]  ;;  %v3174_v35 = vor.u32 %v3776_v23, %v3171_v25  ;;  %v3011_v56 = vld [vmem:[#allocation3 + $0x498] sm:$0xf0] }
  0xdb   :  { %1989 = vmatpush.bf16.msra.mxu2 %v2774_v54  ;;  %v2710_v54 = vor.u32 %v3660_v41, %v2707_v42  ;;  %v3840_v29 = vld [vmem:[#allocation3 + $0x7cc] sm:$0xf]  ;;  %v3302_v36 = vor.u32 %v3808_v26, %v3299_v27  ;;  %v3155_v42 = vld [vmem:[#allocation3 + $0x5b8] sm:$0xf0] }
  0xdc   :  { %2003 = vmatpush.bf16.msra.mxu3 %v2902_v59  ;;  %v2838_v59 = vor.u32 %v3692_v46, %v2835_v48  ;;  %v4078_v14 = vpop.f32.mrf.mxu2  ;;  %v3740_v37 = vld [vmem:[#allocation3 + $0x4ac] sm:$0xf]  ;;  %v3283_v48 = vld [vmem:[#allocation3 + $0x6b8] sm:$0xf0] }
  0xdd   :  { %1962 = vmatpush.bf16.msra.mxu0 %v2502_v2  ;;  %v3780_v2 = vld [vmem:[#allocation3 + $0x5ec] sm:$0xf]  ;;  %v3395_v63 = vld [vmem:[#allocation3 + $0x798] sm:$0xf0] }
  0xde   :  { %1976 = vmatpush.bf16.msra.mxu1 %v2630_v4  ;;  %v2438_v4 = vor.u32 %v3592_v51, %v2435_v52  ;;  %v3772_v40 = vld [vmem:[#allocation3 + $0x5ac] sm:$0xf]  ;;  %v3411_v51 = vld [vmem:[#allocation3 + $0x7b8] sm:$0xf0] }
  0xdf   :  { %1990 = vmatpush.bf16.msra.mxu2 %v2758_v5  ;;  %v3187_v5 = vld [vmem:[#allocation3 + $0x5f8] sm:$0xf0]  ;;  %v3804_v46 = vld [vmem:[#allocation3 + $0x6ac] sm:$0xf] }
  0xe0   :  { %2004 = vmatpush.bf16.msra.mxu3 %v2886_v11  ;;  %v2694_v11 = vor.u32 %v3656_v57, %v2691_v60  ;;  %v4082_v28 = vpop.f32.mrf.mxu0  ;;  %v3736_v55 = vld [vmem:[#allocation3 + $0x48c] sm:$0xf]  ;;  %v3139_v60 = vld [vmem:[#allocation3 + $0x598] sm:$0xf0] }
  0xe1   :  { %1963 = vmatpush.bf16.msra.mxu0 %v2486_v18  ;;  %v4080_v18 = vpop.f32.mrf.mxu3  ;;  %v3800_v61 = vld [vmem:[#allocation3 + $0x68c] sm:$0xf]  ;;  %v2979_v25 = vld [vmem:[#allocation3 + $0x458] sm:$0xf0] }
  0xe2   :  { %1977 = vmatpush.bf16.msra.mxu1 %v2614_v19  ;;  %v3190_v19 = vor.u32 %v3780_v2, %v3187_v5  ;;  %v3732_v5 = vld [vmem:[#allocation3 + $0x46c] sm:$0xf] }
  0xe3   :  { %1991 = vmatpush.bf16.msra.mxu2 %v2742_v20  ;;  %v3318_v20 = vor.u32 %v3812_v6, %v3315_v7  ;;  %v2995_v6 = vld [vmem:[#allocation3 + $0x478] sm:$0xf0]  ;;  %v3764_v7 = vld [vmem:[#allocation3 + $0x56c] sm:$0xf] }
  0xe4   :  { %2005 = vmatpush.bf16.msra.mxu3 %v2870_v24  ;;  %v3446_v24 = vor.u32 %v3844_v12, %v3443_v13  ;;  %v4090_v57 = vpop.f32.mrf.mxu2  ;;  %v3123_v12 = vld [vmem:[#allocation3 + $0x578] sm:$0xf0]  ;;  %v3796_v13 = vld [vmem:[#allocation3 + $0x66c] sm:$0xf] }
  0xe5   :  { %1964 = vmatpush.bf16.msra.mxu0 %v2470_v31  ;;  %v3427_v31 = vld [vmem:[#allocation3 + $0x7d8] sm:$0xf0]  ;;  %v3760_v26 = vld [vmem:[#allocation3 + $0x54c] sm:$0xf] }
  0xe6   :  { %1978 = vmatpush.bf16.msra.mxu1 %v2598_v33  ;;  %v4084_v33 = vpop.f32.mrf.mxu1  ;;  %v3430_v41 = vor.u32 %v3840_v29, %v3427_v31  ;;  %v3107_v29 = vld [vmem:[#allocation3 + $0x558] sm:$0xf0]  ;;  %v3792_v31 = vld [vmem:[#allocation3 + $0x64c] sm:$0xf] }
  0xe7   :  { %1992 = vmatpush.bf16.msra.mxu2 %v2726_v34  ;;  %v3046_v34 = vor.u32 %v3744_v21, %v3043_v22  ;;  %v2998_v21 = vor.u32 %v3732_v5, %v2995_v6  ;;  %v3126_v22 = vor.u32 %v3764_v7, %v3123_v12  ;;  %v3752_v5 = vld [vmem:[#allocation3 + $0x50c] sm:$0xf] }
  0xe8   :  { %2006 = vmatpush.bf16.msra.mxu3 %v2854_v38  ;;  %v3027_v38 = vld [vmem:[#allocation3 + $0x4b8] sm:$0xf0]  ;;  %v4094_v0 = vpop.f32.mrf.mxu0  ;;  %v3784_v12 = vld [vmem:[#allocation3 + $0x60c] sm:$0xf] }
  0xe9   :  { %1965 = vmatpush.bf16.msra.mxu0 %v2454_v50  ;;  %v3836_v50 = vld [vmem:[#allocation3 + $0x7ac] sm:$0xf]  ;;  %v3030_v52 = vor.u32 %v3740_v37, %v3027_v38  ;;  %v4092_v62 = vpop.f32.mrf.mxu3  ;;  %v3363_v37 = vld [vmem:[#allocation3 + $0x758] sm:$0xf0] }
  0xea   :  { %1979 = vmatpush.bf16.msra.mxu1 %v2582_v53  ;;  %v3158_v53 = vor.u32 %v3772_v40, %v3155_v42 }
  0xeb   :  { %1993 = vmatpush.bf16.msra.mxu2 %v2710_v54  ;;  %v3286_v54 = vor.u32 %v3804_v46, %v3283_v48  ;;  %v3110_v46 = vor.u32 %v3760_v26, %v3107_v29 }
  0xec   :  { %2007 = vmatpush.bf16.msra.mxu3 %v2838_v59  ;;  %v3414_v59 = vor.u32 %v3836_v50, %v3411_v51  ;;  %v4104_v38 = vpop.f32.mrf.mxu2  ;;  %v3724_v51 = vld [vmem:[#allocation3 + $0x42c] sm:$0xf] }
  0xed   :  { %1966 = vmatpush.bf16.msra.mxu0 %v2438_v4 }
  0xee   :  { %1980 = vmatpush.bf16.msra.mxu1 %v2566_v8  ;;  %v4096_v8 = vpop.f32.mrf.mxu1 }
  0xef   :  { %1994 = vmatpush.bf16.msra.mxu2 %v2694_v11 }
  0xf0   :  { %2008 = vmatpush.bf16.msra.mxu3 %v2822_v15  ;;  %1967 = vmatmul.bf16.vlgmr.msra.gmra.mxu0 %v3987_v58  ;;  %v3267_v58 = vld [vmem:[#allocation3 + $0x698] sm:$0xf0]  ;;  %v1744_v50 = vpop.f32.mrf.mxu0 }
  0xf1   :  { %2015 = vmatpush.bf16.msrb.mxu0 %v3062_v16  ;;  %1981 = vmatmul.bf16.vlgmr.msra.gmra.mxu1 %v4005_v10  ;;  %v3014_v10 = vor.u32 %v3736_v55, %v3011_v56  ;;  %v3270_v4 = vor.u32 %v3800_v61, %v3267_v58  ;;  %v3251_v15 = vld [vmem:[#allocation3 + $0x678] sm:$0xf0]  ;;  %v3828_v16 = vld [vmem:[#allocation3 + $0x76c] sm:$0xf]  ;;  %v4107_v42 = vpop.f32.mrf.mxu3 }
  0xf2   :  { %2029 = vmatpush.bf16.msrb.mxu1 %v3190_v19  ;;  %1995 = vmatmul.bf16.vlgmr.msra.gmra.mxu2 %v3992_v1  ;;  %v3768_v1 = vld [vmem:[#allocation3 + $0x58c] sm:$0xf]  ;;  %v3379_v19 = vld [vmem:[#allocation3 + $0x778] sm:$0xf0]  ;;  %v3254_v23 = vor.u32 %v3796_v13, %v3251_v15 }
  0xf3   :  { %2043 = vmatpush.bf16.msrb.mxu2 %v3318_v20  ;;  %2009 = vmatmul.bf16.vlgmr.msra.gmra.mxu3 %v4010_v17  ;;  %v3832_v17 = vld [vmem:[#allocation3 + $0x78c] sm:$0xf]  ;;  %v3142_v2 = vor.u32 %v3768_v1, %v3139_v60  ;;  %v4101_v20 = vld [vmem:[%s4167_s2] sm:$0xf]  ;;  %v3382_v27 = vor.u32 %v3828_v16, %v3379_v19  ;;  %v3091_v55 = vld [vmem:[#allocation3 + $0x538] sm:$0xf0] }
  0xf4   :  { %2057 = vmatpush.bf16.msrb.mxu3 %v3446_v24  ;;  %v3398_v11 = vor.u32 %v3832_v17, %v3395_v63  ;;  %v3728_v24 = vld [vmem:[#allocation3 + $0x44c] sm:$0xf]  ;;  %v3219_v1 = vld [vmem:[#allocation3 + $0x638] sm:$0xf0] }
  0xf5   :  { %2016 = vmatpush.bf16.msrb.mxu0 %v3046_v34  ;;  %v3235_v34 = vld [vmem:[#allocation3 + $0x658] sm:$0xf0]  ;;  %v2982_v40 = vor.u32 %v3728_v24, %v2979_v25  ;;  %v3788_v56 = vld [vmem:[#allocation3 + $0x62c] sm:$0xf] }
  0xf6   :  { %2030 = vmatpush.bf16.msrb.mxu1 %v3174_v35  ;;  %v335_v35 = vperm.slane %v4101_v20, 0  ;;  %v3238_v48 = vor.u32 %v3792_v31, %v3235_v34  ;;  %v3820_v61 = vld [vmem:[#allocation3 + $0x72c] sm:$0xf]  ;;  %v3347_v58 = vld [vmem:[#allocation3 + $0x738] sm:$0xf0] }
  0xf7   :  { %2044 = vmatpush.bf16.msrb.mxu2 %v3302_v36  ;;  %v3824_v36 = vld [vmem:[#allocation3 + $0x74c] sm:$0xf]  ;;  %v3350_v7 = vor.u32 %v3820_v61, %v3347_v58  ;;  %v3203_v13 = vld [vmem:[#allocation3 + $0x618] sm:$0xf0] }
  0xf8   :  { %2058 = vmatpush.bf16.msrb.mxu3 %v3430_v41  ;;  %v336_v41 = vperm.slane %v4101_v20, 1  ;;  %v1633_v60 = vadd.f32 %v4066_v3, %v335_v35  ;;  %v3816_v15 = vld [vmem:[#allocation3 + $0x70c] sm:$0xf]  ;;  %v3331_v16 = vld [vmem:[#allocation3 + $0x718] sm:$0xf0]  ;;  %v1746_v31 = vpop.f32.mrf.mxu0 }
  0xf9   :  { %2017 = vmatpush.bf16.msrb.mxu0 %v3030_v52  ;;  %v2963_v52 = vld [vmem:[#allocation3 + $0x438] sm:$0xf0]  ;;  %v1786_v24 = vpop.f32.mrf.mxu3  ;;  %v3334_v26 = vor.u32 %v3816_v15, %v3331_v16 }
  0xfa   :  { %2031 = vmatpush.bf16.msrb.mxu1 %v3158_v53  ;;  %v3756_v53 = vld [vmem:[#allocation3 + $0x52c] sm:$0xf]  ;;  %v2966_v17 = vor.u32 %v3724_v51, %v2963_v52  ;;  %v1745_v6 = vadd.f32 %v1744_v50, %v336_v41  ;;  %v1647_v3 = vadd.f32 %v4068_v9, %v1633_v60  ;;  %v3866_v34 = vld [vmem:[#allocation5 + $0x78] sm:$0xff] }
  0xfb   :  { %2045 = vmatpush.bf16.msrb.mxu2 %v3286_v54  ;;  %v3366_v54 = vor.u32 %v3824_v36, %v3363_v37  ;;  %v3094_v63 = vor.u32 %v3756_v53, %v3091_v55  ;;  %v1635_v36 = vadd.f32 %v4074_v45, %v335_v35  ;;  %v3856_v51 = vld [vmem:[#allocation5 + $0x28] sm:$0xff] }
  0xfc   :  { %2059 = vmatpush.bf16.msrb.mxu3 %v3414_v59  ;;  %v1758_v59 = vpop.f32.mrf.mxu1  ;;  %v1661_v29 = vadd.f32 %v4070_v30, %v1647_v3  ;;  %v3865_v30 = vld [vmem:[#allocation5 + $0x70] sm:$0xff]  ;;  %v3860_v3 = vld [vmem:[#allocation5 + $0x48] sm:$0xff] }
  0xfd   :  { %2018 = vmatpush.bf16.msrb.mxu0 %v3014_v10  ;;  %v3222_v10 = vor.u32 %v3788_v56, %v3219_v1  ;;  %v1759_v25 = vadd.f32 %v1758_v59, %v1745_v6  ;;  %v1649_v45 = vadd.f32 %v4076_v49, %v1635_v36  ;;  %v3863_v56 = vld [vmem:[#allocation5 + $0x60] sm:$0xff]  ;;  %v3861_v6 = vld [vmem:[#allocation5 + $0x50] sm:$0xff] }
  0xfe   :  { %2032 = vmatpush.bf16.msrb.mxu1 %v3142_v2  ;;  %v3720_v2 = vld [vmem:[#allocation3 + $0x40c] sm:$0xf] }
  0xff   :  { %2046 = vmatpush.bf16.msrb.mxu2 %v3270_v4  ;;  %v2947_v4 = vld [vmem:[#allocation3 + $0x418] sm:$0xf0]  ;;  %v1663_v53 = vadd.f32 %v4078_v14, %v1649_v45 }
 0x100   :  { %2060 = vmatpush.bf16.msrb.mxu3 %v3398_v11  ;;  %v3075_v11 = vld [vmem:[#allocation3 + $0x518] sm:$0xf0]  ;;  %v2950_v19 = vor.u32 %v3720_v2, %v2947_v4 }
 0x101   :  { %2019 = vmatpush.bf16.msrb.mxu0 %v2998_v21  ;;  %v1772_v21 = vpop.f32.mrf.mxu2  ;;  %v1788_v52 = vpop.f32.mrf.mxu3  ;;  %v1677_v1 = vadd.f32 %v4080_v18, %v1663_v53  ;;  %v3862_v14 = vld [vmem:[#allocation5 + $0x58] sm:$0xff]  ;;  %v3880_v53 = vld [vmem:[#allocation5 + $0xe8] sm:$0xff] }
 0x102   :  { %2033 = vmatpush.bf16.msrb.mxu1 %v3126_v22  ;;  %v3078_v22 = vor.u32 %v3752_v5, %v3075_v11  ;;  %v1773_v37 = vadd.f32 %v1772_v21, %v1759_v25  ;;  %v3874_v45 = vld [vmem:[#allocation5 + $0xb8] sm:$0xff] }
 0x103   :  { %2047 = vmatpush.bf16.msrb.mxu2 %v3254_v23  ;;  %v3206_v23 = vor.u32 %v3784_v12, %v3203_v13  ;;  %v3852_v12 = vld [vmem:[#allocation5 + $0x8] sm:$0xff] }
 0x104   :  { %2061 = vmatpush.bf16.msrb.mxu3 %v3382_v27  ;;  %v3858_v27 = vld [vmem:[#allocation5 + $0x38] sm:$0xff]  ;;  %v1760_v9 = vpop.f32.mrf.mxu1  ;;  %v1787_v35 = vadd.f32 %v1786_v24, %v1773_v37 }
 0x105   :  { %2020 = vmatpush.bf16.msrb.mxu0 %v2982_v40  ;;  %v3857_v40 = vld [vmem:[#allocation5 + $0x30] sm:$0xff] }
 0x106   :  { %2034 = vmatpush.bf16.msrb.mxu1 %v3110_v46  ;;  %v1675_v46 = vadd.f32 %v4072_v32, %v1661_v29 }
 0x107   :  { %2048 = vmatpush.bf16.msrb.mxu2 %v3238_v48  ;;  %v1747_v48 = vadd.f32 %v1746_v31, %v336_v41  ;;  %v3864_v41 = vld [vmem:[#allocation5 + $0x68] sm:$0xff] }
 0x108   :  { %2062 = vmatpush.bf16.msrb.mxu3 %v3366_v54  ;;  %v1689_v32 = vadd.f32 %v4082_v28, %v1675_v46  ;;  %v3854_v28 = vld [vmem:[#allocation5 + $0x18] sm:$0xff] }
 0x109   :  { %2021 = vmatpush.bf16.msrb.mxu0 %v2966_v17  ;;  %v1774_v50 = vpop.f32.mrf.mxu2  ;;  %v1691_v17 = vadd.f32 %v4094_v0, %v1677_v1 }
 0x10a   :  { %2035 = vmatpush.bf16.msrb.mxu1 %v3094_v63  ;;  %v1703_v49 = vadd.f32 %v4084_v33, %v1689_v32  ;;  %v3853_v33 = vld [vmem:[#allocation5 + $0x10] sm:$0xff] }
 0x10b   :  { %2049 = vmatpush.bf16.msrb.mxu2 %v3222_v10  ;;  %v3881_v32 = vld [vmem:[#allocation5 + $0xf0] sm:$0xff] }
 0x10c   :  { %2063 = vmatpush.bf16.msrb.mxu3 %v3350_v7  ;;  %v1717_v60 = vadd.f32 %v4090_v57, %v1703_v49  ;;  %v1705_v57 = vadd.f32 %v4096_v8, %v1691_v17  ;;  %v3869_v17 = vld [vmem:[#allocation5 + $0x90] sm:$0xff] }
 0x10d   :  { %2022 = vmatpush.bf16.msrb.mxu0 %v2950_v19  ;;  %v1800_v54 = vpop.f32.mrf.mxu0 }
 0x10e   :  { %2036 = vmatpush.bf16.msrb.mxu1 %v3078_v22  ;;  %v1814_v55 = vpop.f32.mrf.mxu1  ;;  %v1731_v4 = vadd.f32 %v4092_v62, %v1717_v60  ;;  %v1719_v13 = vadd.f32 %v4104_v38, %v1705_v57  ;;  %v3851_v62 = vld [vmem:[#allocation5] sm:$0xff]  ;;  %v3878_v60 = vld [vmem:[#allocation5 + $0xd8] sm:$0xff] }
 0x10f   :  { %2050 = vmatpush.bf16.msrb.mxu2 %v3206_v23  ;;  %v3859_v23 = vld [vmem:[#allocation5 + $0x40] sm:$0xff] }
 0x110   :  { %2064 = vmatpush.bf16.msrb.mxu3 %v3334_v26  ;;  %2023 = vmatmul.bf16.vlgmr.msrb.gmra.mxu0 %v4038_v39  ;;  %v1761_v39 = vadd.f32 %v1760_v9, %v1747_v48  ;;  %v1733_v21 = vadd.f32 %v4107_v42, %v1719_v13  ;;  %v3867_v57 = vld [vmem:[#allocation5 + $0x80] sm:$0xff] }
 0x111   :  { %2359 = vmatpush.bf16.msra.mxu0 %v3858_v27  ;;  %2037 = vmatmul.bf16.vlgmr.msrb.gmra.mxu1 %v4042_v44  ;;  %v1801_v44 = vadd.f32 %v1800_v54, %v1787_v35  ;;  %v3882_v35 = vld [vmem:[#allocation5 + $0xf8] sm:$0xff] }
 0x112   :  { %2373 = vmatpush.bf16.msra.mxu1 %v3866_v34  ;;  %2051 = vmatmul.bf16.vlgmr.msrb.gmra.mxu2 %v4040_v43  ;;  %v3855_v43 = vld [vmem:[#allocation5 + $0x20] sm:$0xff] }
 0x113   :  { %2065 = vmatmul.bf16.vlgmr.msrb.gmra.mxu3 %v4044_v47  ;;  %v1775_v47 = vadd.f32 %v1774_v50, %v1761_v39  ;;  %v1815_v59 = vadd.f32 %v1814_v55, %v1801_v44  ;;  %2387 = vmatpush.bf16.msra.mxu2 %v3874_v45  ;;  %v337_v44 = vperm.slane %v4101_v20, 2  ;;  %v3871_v55 = vld [vmem:[#allocation5 + $0xa0] sm:$0xff] }
 0x114   :  { %2401 = vmatpush.bf16.msra.mxu3 %v3882_v35 }
 0x115   :  { %2360 = vmatpush.bf16.msra.mxu0 %v3857_v40  ;;  %v1789_v61 = vadd.f32 %v1788_v52, %v1775_v47  ;;  %v1828_v58 = vpop.f32.mrf.mxu2  ;;  %v1802_v10 = vpop.f32.mrf.mxu0 }
 0x116   :  { %2374 = vmatpush.bf16.msra.mxu1 %v3865_v30  ;;  %v1829_v63 = vadd.f32 %v1828_v58, %v1815_v59  ;;  %v1842_v2 = vpop.f32.mrf.mxu3  ;;  %v1816_v7 = vpop.f32.mrf.mxu1  ;;  %v338_v59 = vperm.slane %v4101_v20, 3 }
 0x117   :  { %v1803_v5 = vadd.f32 %v1802_v10, %v1789_v61 }
 0x118   :  { %v1843_v18 = vadd.f32 %v1842_v2, %v1829_v63  ;;  %2402 = vmatpush.bf16.msra.mxu3 %v3881_v32  ;;  %v3877_v63 = vld [vmem:[#allocation5 + $0xd0] sm:$0xff] }
 0x119   :  { %2361 = vmatpush.bf16.msra.mxu0 %v3856_v51  ;;  %v1817_v0 = vadd.f32 %v1816_v7, %v1803_v5  ;;  %v3873_v51 = vld [vmem:[#allocation5 + $0xb0] sm:$0xff]  ;;  %v3876_v5 = vld [vmem:[#allocation5 + $0xc8] sm:$0xff] }
 0x11a   :  { %2375 = vmatpush.bf16.msra.mxu1 %v3864_v41  ;;  %v2071_v11 = vpack.c.bf16 %v1843_v18, %v1731_v4  ;;  %2388 = vmatpush.bf16.msra.mxu2 %v3873_v51  ;;  %v3872_v41 = vld [vmem:[#allocation5 + $0xa8] sm:$0xff] }
 0x11b   :  { %v3868_v4 = vld [vmem:[#allocation5 + $0x88] sm:$0xff] }
 0x11c   :  { %2075 = vst [vmem:[#allocation2] sm:$0xff] %v2071_v11  ;;  %2403 = vmatpush.bf16.msra.mxu3 %v3880_v53  ;;  %v3875_v11 = vld [vmem:[#allocation5 + $0xc0] sm:$0xff] }
 0x11d   :  { %2362 = vmatpush.bf16.msra.mxu0 %v3855_v43  ;;  %v1830_v15 = vpop.f32.mrf.mxu2  ;;  %v3879_v43 = vld [vmem:[#allocation5 + $0xe0] sm:$0xff] }
 0x11e   :  { %2376 = vmatpush.bf16.msra.mxu1 %v3863_v56  ;;  %v1831_v16 = vadd.f32 %v1830_v15, %v1817_v0  ;;  %v1844_v19 = vpop.f32.mrf.mxu3  ;;  %2389 = vmatpush.bf16.msra.mxu2 %v3872_v41 }
 0x120   :  { %v1845_v22 = vadd.f32 %v1844_v19, %v1831_v16  ;;  %2404 = vmatpush.bf16.msra.mxu3 %v3879_v43 }
 0x121   :  { %2363 = vmatpush.bf16.msra.mxu0 %v3854_v28  ;;  %v3870_v28 = vld [vmem:[#allocation5 + $0x98] sm:$0xff] }
 0x122   :  { %2377 = vmatpush.bf16.msra.mxu1 %v3862_v14  ;;  %v2073_v8 = vpack.c.bf16 %v1845_v22, %v1733_v21  ;;  %2390 = vmatpush.bf16.msra.mxu2 %v3871_v55 }
 0x123   :  { %v3449_v24 = vld [vmem:[#allocation2] sm:$0xf]  ;;  %v3847_v25 = vld [vmem:[#allocation2 + $0x4] sm:$0xf] }
 0x124   :  { %2077 = vst [vmem:[#allocation2 + $0x10] sm:$0xff] %v2073_v8  ;;  %2405 = vmatpush.bf16.msra.mxu3 %v3878_v60 }
 0x125   :  { %2364 = vmatpush.bf16.msra.mxu0 %v3853_v33 }
 0x126   :  { %2378 = vmatpush.bf16.msra.mxu1 %v3861_v6  ;;  %2391 = vmatpush.bf16.msra.mxu2 %v3870_v28 }
 0x128   :  { %2406 = vmatpush.bf16.msra.mxu3 %v3877_v63 }
 0x129   :  { %2365 = vmatpush.bf16.msra.mxu0 %v3852_v12 }
 0x12a   :  { %2379 = vmatpush.bf16.msra.mxu1 %v3860_v3  ;;  %2392 = vmatpush.bf16.msra.mxu2 %v3869_v17 }
 0x12b   :  { %v3849_v38 = vld [vmem:[#allocation2 + $0xc] sm:$0xf0]  ;;  %v3451_v26 = vld [vmem:[#allocation2 + $0x10] sm:$0xf0] }
 0x12c   :  { %v3450_v27 = vor.u32 %v3849_v38, %v3449_v24  ;;  %v3454_v29 = vor.u32 %v3847_v25, %v3451_v26  ;;  %2407 = vmatpush.bf16.msra.mxu3 %v3876_v5 }
 0x12d   :  { %2366 = vmatpush.bf16.msra.mxu0 %v3851_v62  ;;  %v1856_v31 = vpop.f32.mrf.mxu0 }
 0x12e   :  { %2380 = vmatpush.bf16.msra.mxu1 %v3859_v23  ;;  %v1870_v34 = vpop.f32.mrf.mxu1  ;;  %v1857_v47 = vadd.f32 %v1856_v31, %v337_v44  ;;  %2393 = vmatpush.bf16.msra.mxu2 %v3868_v4 }
 0x130   :  { %2367 = vmatmul.bf16.vlgmr.msra.gmra.mxu0 %v3450_v27  ;;  %v1871_v14 = vadd.f32 %v1870_v34, %v1857_v47  ;;  %2408 = vmatpush.bf16.msra.mxu3 %v3875_v11 }
 0x131   :  { %2381 = vmatmul.bf16.vlgmr.msra.gmra.mxu1 %v3454_v29 }
 0x132   :  { %2394 = vmatpush.bf16.msra.mxu2 %v3867_v57 }
 0x135   :  { %v1884_v9 = vpop.f32.mrf.mxu2  ;;  %v1858_v42 = vpop.f32.mrf.mxu0 }
 0x136   :  { %v1898_v36 = vpop.f32.mrf.mxu3  ;;  %v1872_v37 = vpop.f32.mrf.mxu1  ;;  %v1885_v2 = vadd.f32 %v1884_v9, %v1871_v14  ;;  %v1859_v18 = vadd.f32 %v1858_v42, %v337_v44 }
 0x138   :  { %v1899_v20 = vadd.f32 %v1898_v36, %v1885_v2  ;;  %v1873_v13 = vadd.f32 %v1872_v37, %v1859_v18 }
 0x13d   :  { %v1886_v40 = vpop.f32.mrf.mxu2 }
 0x13e   :  { %v4133_v46 = vpop.f32.mrf.mxu3  ;;  %v1887_v19 = vadd.f32 %v1886_v40, %v1873_v13 }
 0x140   :  { %v1901_v25 = vadd.f32 %v4133_v46, %v1887_v19 }
 0x14d   :  { %v1912_v48 = vpop.f32.mrf.mxu0 }
 0x14e   :  { %v4135_v30 = vpop.f32.mrf.mxu1  ;;  %v1913_v15 = vadd.f32 %v1912_v48, %v1899_v20 }
 0x150   :  { %v1927_v8 = vadd.f32 %v4135_v30, %v1913_v15 }
 0x155   :  { %v4137_v50 = vpop.f32.mrf.mxu2  ;;  %v4141_v52 = vpop.f32.mrf.mxu0 }
 0x156   :  { %v4139_v39 = vpop.f32.mrf.mxu3  ;;  %v4143_v54 = vpop.f32.mrf.mxu1  ;;  %v1941_v27 = vadd.f32 %v4137_v50, %v1927_v8  ;;  %v1915_v34 = vadd.f32 %v4141_v52, %v1901_v25 }
 0x158   :  { %v1955_v40 = vadd.f32 %v4139_v39, %v1941_v27  ;;  %v1929_v30 = vadd.f32 %v4143_v54, %v1915_v34 }
 0x15d   :  { %v4146_v49 = vpop.f32.mrf.mxu2 }
 0x15e   :  { %v4148_v56 = vpop.f32.mrf.mxu3  ;;  %v1943_v46 = vadd.f32 %v4146_v49, %v1929_v30 }
 0x160   :  { %v1957_v52 = vadd.f32 %v4148_v56, %v1943_v46 }
 0x16d   :  { %v1968_v1 = vpop.f32.mrf.mxu0 }
 0x16e   :  { %v1982_v61 = vpop.f32.mrf.mxu1  ;;  %v1969_v58 = vadd.f32 %v1968_v1, %v338_v59 }
 0x170   :  { %v1983_v6 = vadd.f32 %v1982_v61, %v1969_v58 }
 0x175   :  { %v1996_v10 = vpop.f32.mrf.mxu2  ;;  %v1970_v7 = vpop.f32.mrf.mxu0 }
 0x176   :  { %v2010_v33 = vpop.f32.mrf.mxu3  ;;  %v1984_v12 = vpop.f32.mrf.mxu1  ;;  %v1997_v0 = vadd.f32 %v1996_v10, %v1983_v6  ;;  %v1971_v3 = vadd.f32 %v1970_v7, %v338_v59 }
 0x178   :  { %v2011_v62 = vadd.f32 %v2010_v33, %v1997_v0  ;;  %v1985_v21 = vadd.f32 %v1984_v12, %v1971_v3 }
 0x17d   :  { %v1998_v16 = vpop.f32.mrf.mxu2 }
 0x17e   :  { %v2012_v22 = vpop.f32.mrf.mxu3  ;;  %v1999_v26 = vadd.f32 %v1998_v16, %v1985_v21 }
 0x180   :  { %v2013_v9 = vadd.f32 %v2012_v22, %v1999_v26 }
 0x18d   :  { %v2024_v23 = vpop.f32.mrf.mxu0 }
 0x18e   :  { %v2025_v24 = vadd.f32 %v2024_v23, %v2011_v62  ;;  %v2038_v38 = vpop.f32.mrf.mxu1 }
 0x190   :  { %v2039_v29 = vadd.f32 %v2038_v38, %v2025_v24 }
 0x195   :  { %v2052_v31 = vpop.f32.mrf.mxu2  ;;  %v2026_v37 = vpop.f32.mrf.mxu0 }
 0x196   :  { %v2053_v36 = vadd.f32 %v2052_v31, %v2039_v29  ;;  %v2066_v42 = vpop.f32.mrf.mxu3  ;;  %v2027_v45 = vadd.f32 %v2026_v37, %v2013_v9  ;;  %v2040_v51 = vpop.f32.mrf.mxu1 }
 0x198   :  { %v2067_v48 = vadd.f32 %v2066_v42, %v2053_v36  ;;  %v2041_v50 = vadd.f32 %v2040_v51, %v2027_v45 }
 0x19a   :  { %v2072_v35 = vpack.c.bf16 %v2067_v48, %v1955_v40 }
 0x19c   :  { %2076 = vst [vmem:[#allocation2 + $0x8] sm:$0xff] %v2072_v35 }
 0x19d   :  { %v2054_v32 = vpop.f32.mrf.mxu2 }
 0x19e   :  { %v2055_v41 = vadd.f32 %v2054_v32, %v2041_v50  ;;  %v2068_v53 = vpop.f32.mrf.mxu3 }
 0x1a0   :  { %v2069_v44 = vadd.f32 %v2068_v53, %v2055_v41 }
 0x1a2   :  { %v2074_v55 = vpack.c.bf16 %v2069_v44, %v1957_v52 }
 0x1a3   :  { %v3457_v43 = vld [vmem:[#allocation2 + $0x8] sm:$0xf]  ;;  %v3848_v47 = vld [vmem:[#allocation2 + $0xc] sm:$0xf] }
 0x1a4   :  { %2078 = vst [vmem:[#allocation2 + $0x18] sm:$0xff] %v2074_v55 }
 0x1ab   :  { %v3850_v39 = vld [vmem:[#allocation2 + $0x14] sm:$0xf0]  ;;  %v3459_v1 = vld [vmem:[#allocation2 + $0x18] sm:$0xf0] }
 0x1ac   :  { %v3458_v59 = vor.u32 %v3850_v39, %v3457_v43  ;;  %v3462_v54 = vor.u32 %v3848_v47, %v3459_v1 }
 0x1ad   :  { %v2368_v28 = vpop.f32.mrf.mxu0 }
 0x1ae   :  { %2395 = vmatmul.bf16.vlgmr.msra.gmra.mxu2 %v3458_v59  ;;  %2409 = vmatmul.bf16.vlgmr.msra.gmra.mxu3 %v3462_v54  ;;  %v2382_v49 = vpop.f32.mrf.mxu1 }
 0x1af   :  { %v2383_v60 = vadd.f32 %v2382_v49, %v2368_v28 }
 0x1b5   :  { %v2370_v63 = vpop.f32.mrf.mxu0 }
 0x1b6   :  { %v2384_v56 = vpop.f32.mrf.mxu1 }
 0x1b7   :  { %v2385_v10 = vadd.f32 %v2384_v56, %v2370_v63 }
 0x231   :  { %v2396_v61 = vpop.f32.mrf.mxu2  ;;  %v2410_v14 = vpop.f32.mrf.mxu3 }
 0x232   :  { %v2397_v58 = vadd.f32 %v2396_v61, %v2383_v60 }
 0x234   :  { %v2411_v17 = vadd.f32 %v2410_v14, %v2397_v58 }
 0x236   :  { %2415 = vst [vmem:[%s4169_s4] sm:$0xff] %v2411_v17 }
 0x239   :  { %v2398_v2 = vpop.f32.mrf.mxu2  ;;  %v2412_v4 = vpop.f32.mrf.mxu3 }
 0x23a   :  { %v2399_v33 = vadd.f32 %v2398_v2, %v2385_v10 }
 0x23c   :  { %v2413_v5 = vadd.f32 %v2412_v4, %v2399_v33 }
 0x23e   :  { %2416 = vst [vmem:[%s4169_s4 + $0x8] sm:$0xff] %v2413_v5 }
 0x23f   :  { %2421 = vsyncpa [#allocation4], 1 }
 0x240   :  { %2422 = vsyncpa [#allocation6], 1 }

</bundles_post_ra>
